<compile_context>
chip_gen: v7x
topology: tpu7x:2x2x1
jax: 0.10.0
libtpu: 0.0.40
codegen_flags: <defaults>
</compile_context>

<pallas_src>
import functools

import jax
import jax.numpy as jnp
from jax import lax
from jax.experimental import pallas as pl
from jax.experimental.pallas import tpu as pltpu


def _vq_kernel(z_ref, e_ref, et_ref, ehalf_ref, zq_ref, idx_ref, loss_ref, *,
               chunk, tile, n_valid, n_total):
    """One grid step processes a (D, tile) slab in (D, chunk) register-sized pieces.

    z_ref    : (D, tile)    VMEM  -- inputs, positions on the lane axis
    e_ref    : (K, D)       VMEM  -- codebook (constant block -> resident)
    et_ref   : (D, K)       VMEM  -- codebook transposed (wrapper-precomputed)
    ehalf_ref: (K, 1)       VMEM  -- 0.5 * ||e_k||^2 (f32, wrapper-precomputed)
    zq_ref   : (D, tile)    VMEM  -- quantized output (straight-through value)
    idx_ref  : (1, 1, tile) VMEM  -- argmin code indices (int32), lane-dense
    loss_ref : (1, 1, 1)    VMEM  -- per-step sum over valid cols of ||z_q - z||^2
    """
    K = e_ref.shape[0]
    num_chunks = tile // chunk
    step = pl.program_id(0)

    # Loop-invariant (K, chunk) constants, hoisted out of the chunk loop:
    # a single f32 code-index iota (reused by the argmin select AND the
    # one-hot compare) and the lane-broadcast 0.5*||e||^2 bias.
    iota_f = lax.broadcasted_iota(jnp.int32, (K, chunk), 0).astype(jnp.float32)
    e_bias = jnp.broadcast_to(ehalf_ref[...], (K, chunk))
    if n_valid < n_total:
        lane = lax.broadcasted_iota(jnp.int32, (1, chunk), 1)

    def body(c, lane_sse):
        off = pl.multiple_of(c * chunk, chunk)
        z = z_ref[:, pl.ds(off, chunk)]                            # (D, chunk)

        # 0.5*||e_k||^2 - <e_k, z_t>: same argmin as the full distance
        # (||z_t||^2 is constant per column).  HIGHEST precision so the f32
        # MXU matmul cannot flip near-ties vs. an exact fp32 reference.
        cross = lax.dot_general(
            e_ref[...], z, (((1,), (0,)), ((), ())),
            preferred_element_type=jnp.float32,
            precision=lax.Precision.HIGHEST)                       # (K, chunk)
        d = e_bias - cross

        # argmin over codes (first occurrence on ties); index min done in f32,
        # exact because n_e < 2**24 (asserted in the wrapper).
        d_min = jnp.min(d, axis=0, keepdims=True)                  # (1, chunk)
        idx_f = jnp.min(jnp.where(d == d_min, iota_f, jnp.float32(K)),
                        axis=0, keepdims=True)                     # (1, chunk)
        idx_i = idx_f.astype(jnp.int32)

        # Codebook gather via one-hot matmul; one_hot is built and consumed
        # inside the same chunk (never stored to VMEM).
        one_hot = (iota_f == idx_f).astype(et_ref.dtype)           # (K, chunk)
        z_q = lax.dot_general(
            et_ref[...], one_hot, (((1,), (0,)), ((), ())),
            preferred_element_type=jnp.float32,
            precision=lax.Precision.HIGHEST)                       # (D, chunk)

        zq_ref[:, pl.ds(off, chunk)] = z_q.astype(zq_ref.dtype)
        idx_ref[:, :, pl.ds(off, chunk)] = idx_i[None]

        diff = z_q - z.astype(jnp.float32)
        col_sse = jnp.sum(diff * diff, axis=0, keepdims=True)      # (1, chunk)
        if n_valid < n_total:
            gcol = step * tile + off + lane
            col_sse = jnp.where(gcol < n_valid, col_sse, 0.0)
        return lane_sse + col_sse

    lane_sse = lax.fori_loop(0, num_chunks, body,
                             jnp.zeros((1, chunk), jnp.float32))
    # Single in-kernel scalar per grid step (cross-lane reduce rides the XLU,
    # which has slack while the VPU is the binding unit).
    loss_ref[...] = jnp.sum(lane_sse, axis=1, keepdims=True)[None]


def _round_up(x, m):
    return -(-x // m) * m


def vector_quantizer_forward(z_nchw, embedding, beta=0.25, tile=8192, chunk=128):
    """Forward of VectorQuantizer (legacy=True, remap=None, sane_index_shape=False).

    z_nchw:    (B, C, H, W) with C == e_dim
    embedding: (n_e, e_dim)
    Returns (z_q [B,C,H,W], loss scalar,
             (None, None, min_encoding_indices [B*H*W] int32)).
    """
    B, C, H, W = z_nchw.shape
    n_e, e_dim = embedding.shape
    assert C == e_dim
    assert n_e < (1 << 24), "f32-encoded argmin requires n_e < 2**24"
    assert chunk % 128 == 0, "chunk must be a multiple of the 128-lane width"

    N = B * H * W
    # Big DMA tile (amortizes ~0.35us/step grid overhead), clamped so tiny
    # inputs don't pad to a full slab; compute runs in `chunk`-lane pieces.
    tile = max(chunk, min(_round_up(tile, chunk), _round_up(N, chunk)))
    n_steps = pl.cdiv(N, tile)
    n_pad = n_steps * tile

    # b c h w -> c (b h w); column order matches NHWC row-flatten order.
    z_t = jnp.transpose(z_nchw, (1, 0, 2, 3)).reshape(e_dim, N)
    if n_pad != N:
        z_t = jnp.pad(z_t, ((0, 0), (0, n_pad - N)))

    # Hoist all codebook-constant work out of the kernel (one-time O(K*D)),
    # with the factor 2 folded into the squared-norm bias.
    e_t = jnp.transpose(embedding)                                  # (D, K)
    e_half_sq = 0.5 * jnp.sum(embedding.astype(jnp.float32) ** 2,
                              axis=1, keepdims=True)                # (K, 1)

    kernel = functools.partial(_vq_kernel, chunk=chunk, tile=tile,
                               n_valid=N, n_total=n_pad)

    zq_t, idx, loss_parts = pl.pallas_call(
        kernel,
        out_shape=(
            jax.ShapeDtypeStruct((e_dim, n_pad), z_nchw.dtype),
            jax.ShapeDtypeStruct((n_steps, 1, tile), jnp.int32),
            jax.ShapeDtypeStruct((n_steps, 1, 1), jnp.float32),
        ),
        grid=(n_steps,),
        in_specs=[
            pl.BlockSpec((e_dim, tile), lambda i: (0, i)),
            # Constant block index -> codebook stays VMEM-resident across grid.
            # TODO(synk): for codebooks with n_e*e_dim approaching VMEM (esp.
            # v7x's 64 MiB), stream K via an extra grid axis with a running
            # min/argmin and single-buffer these specs (pl.Buffered(1)).
            pl.BlockSpec((n_e, e_dim), lambda i: (0, 0)),
            pl.BlockSpec((e_dim, n_e), lambda i: (0, 0)),
            pl.BlockSpec((n_e, 1), lambda i: (0, 0)),
        ],
        out_specs=(
            pl.BlockSpec((e_dim, tile), lambda i: (0, i)),
            pl.BlockSpec((1, 1, tile), lambda i: (i, 0, 0)),
            pl.BlockSpec((1, 1, 1), lambda i: (i, 0, 0)),
        ),
        compiler_params=pltpu.CompilerParams(
            # Stateless across steps -> shardable over both TensorCores (v7x).
            dimension_semantics=("parallel",),
        ),
    )(z_t, embedding, e_t, e_half_sq)

    # Unpad / reshape back to PyTorch layouts.
    z_q = zq_t[:, :N].reshape(C, B, H, W).transpose(1, 0, 2, 3)
    min_encoding_indices = idx.reshape(-1)[:N]

    # legacy loss forward value == (1 + beta) * mean((z_q - z)^2); padded
    # columns were already masked out inside the kernel.
    loss = (1.0 + beta) * jnp.sum(loss_parts) / jnp.float32(N * e_dim)

    # TODO(synk): forward-only; a custom_vjp would be needed to reproduce the
    # straight-through estimator / beta-weighted loss gradients for training.
    perplexity = None
    min_encodings = None
    return z_q, loss, (perplexity, min_encodings, min_encoding_indices)


def _reference(z, embedding, beta):
    """Pure-JAX mirror of the PyTorch forward (legacy=True)."""
    B, C, H, W = z.shape
    zf = jnp.transpose(z, (0, 2, 3, 1)).reshape(-1, C).astype(jnp.float32)
    ef = embedding.astype(jnp.float32)
    d = (jnp.sum(zf ** 2, axis=1, keepdims=True)
         + jnp.sum(ef ** 2, axis=1)[None, :]
         - 2.0 * jnp.dot(zf, ef.T, precision=lax.Precision.HIGHEST))
    idx = jnp.argmin(d, axis=1)
    zq = ef[idx].reshape(B, H, W, C).transpose(0, 3, 1, 2)
    loss = (1.0 + beta) * jnp.mean((zq - z.astype(jnp.float32)) ** 2)
    return zq.astype(z.dtype), loss, idx.astype(jnp.int32)


if __name__ == "__main__":
    # Module hyperparameters (synthetic, deterministic init)
    n_e = 128       # codebook size
    e_dim = 4       # embedding dim == number of channels
    beta = 0.25

    key = jax.random.PRNGKey(0)
    k_z1, k_z2, k_e = jax.random.split(key, 3)
    # embedding.weight.data.uniform_(-1/n_e, 1/n_e)
    embedding = jax.random.uniform(
        k_e, (n_e, e_dim), dtype=jnp.float32,
        minval=-1.0 / n_e, maxval=1.0 / n_e)

    # Case 1: multi-step grid (tile=256 -> 2 steps x 2 inner chunks), no padding.
    z1 = jax.random.normal(k_z1, (2, e_dim, 16, 16), dtype=jnp.float32)
    z_q1, loss1, (_, _, idx1) = vector_quantizer_forward(
        z1, embedding, beta, tile=256, chunk=128)
    jax.block_until_ready((z_q1, loss1, idx1))
    zq_r1, loss_r1, idx_r1 = _reference(z1, embedding, beta)
    assert jnp.array_equal(idx1, idx_r1)
    assert jnp.allclose(z_q1, zq_r1, atol=1e-6)
    assert jnp.allclose(loss1, loss_r1, atol=1e-5, rtol=1e-5)

    # Case 2: defaults (tile auto-clamps to 512); N=480 exercises the
    # in-kernel padded-tail masking of the loss.
    z2 = jax.random.normal(k_z2, (2, e_dim, 16, 15), dtype=jnp.float32)
    z_q2, loss2, (_, _, idx2) = vector_quantizer_forward(z2, embedding, beta)
    jax.block_until_ready((z_q2, loss2, idx2))
    zq_r2, loss_r2, idx_r2 = _reference(z2, embedding, beta)
    assert jnp.array_equal(idx2, idx_r2)
    assert jnp.allclose(z_q2, zq_r2, atol=1e-6)
    assert jnp.allclose(loss2, loss_r2, atol=1e-5, rtol=1e-5)

    print("KERNEL_OK")
</pallas_src>

<mosaic_0001>
module attributes {stable_mosaic.version = 11 : i64} {
  func.func @_vq_kernel(%arg0: i32, %arg1: memref<4x256xf32, #tpu.memory_space<vmem>>, %arg2: memref<128x4xf32, #tpu.memory_space<vmem>>, %arg3: memref<4x128xf32, #tpu.memory_space<vmem>>, %arg4: memref<128x1xf32, #tpu.memory_space<vmem>>, %arg5: memref<4x256xf32, #tpu.memory_space<vmem>>, %arg6: memref<1x1x256xi32, #tpu.memory_space<vmem>>, %arg7: memref<1x1x1xf32, #tpu.memory_space<vmem>>) attributes {dimension_semantics = [#tpu.dimension_semantics<parallel>], iteration_bounds = array<i64: 2>, scalar_prefetch = 0 : i64, scratch_operands = 0 : i64, tpu.core_type = #tpu.core_type<tc>, window_params = [{transform_indices = @transform_0, window_bounds = array<i64: 4, 256>}, {pipeline_mode = #tpu.pipeline_mode<synchronous>, transform_indices = @transform_1, window_bounds = array<i64: 128, 4>}, {pipeline_mode = #tpu.pipeline_mode<synchronous>, transform_indices = @transform_2, window_bounds = array<i64: 4, 128>}, {pipeline_mode = #tpu.pipeline_mode<synchronous>, transform_indices = @transform_3, window_bounds = array<i64: 128, 1>}, {transform_indices = @transform_4, window_bounds = array<i64: 4, 256>}, {transform_indices = @transform_5, window_bounds = array<i64: 1, 1, 256>}, {transform_indices = @transform_6, window_bounds = array<i64: 1, 1, 1>}]} {
    %0 = tpu.iota {dimensions = array<i32: 0>} : vector<128x128xi32>
    %1 = arith.sitofp %0 : vector<128x128xi32> to vector<128x128xf32>
    %c0 = arith.constant 0 : index
    %c0_0 = arith.constant 0 : index
    %2 = vector.load %arg4[%c0, %c0_0] : memref<128x1xf32, #tpu.memory_space<vmem>>, vector<128x1xf32>
    %3 = vector.shape_cast %2 : vector<128x1xf32> to vector<128x1xf32>
    %4 = vector.broadcast %3 : vector<128x1xf32> to vector<128x128xf32>
    %cst = arith.constant 0.000000e+00 : f32
    %5 = vector.broadcast %cst : f32 to vector<1x128xf32>
    %c0_i32 = arith.constant 0 : i32
    %c2_i32 = arith.constant 2 : i32
    %6 = arith.addi %c0_i32, %c2_i32 : i32
    %c1_i32 = arith.constant 1 : i32
    %7 = scf.for %arg8 = %c0_i32 to %6 step %c1_i32 iter_args(%arg9 = %5) -> (vector<1x128xf32>)  : i32 {
      %c128_i32 = arith.constant 128 : i32
      %12 = arith.muli %arg8, %c128_i32 : i32
      %13 = tpu.assume_multiple %12, 128 : i32
      %c0_6 = arith.constant 0 : index
      %14 = arith.index_cast %13 : i32 to index
      %15 = vector.load %arg1[%c0_6, %14] : memref<4x256xf32, #tpu.memory_space<vmem>>, vector<4x128xf32>
      %c0_7 = arith.constant 0 : index
      %c0_8 = arith.constant 0 : index
      %16 = vector.load %arg2[%c0_7, %c0_8] : memref<128x4xf32, #tpu.memory_space<vmem>>, vector<128x4xf32>
      %cst_9 = arith.constant dense<0.000000e+00> : vector<128x128xf32>
      %17 = tpu.matmul %16, %15, %cst_9 {dimension_numbers = #tpu.dot_dimension_numbers<[1], [0], [0], [1], [0, 0, 1, 1], [], []>, precision = #tpu.contract_precision<fp32>} : vector<128x4xf32>, vector<4x128xf32>, vector<128x128xf32> -> vector<128x128xf32>
      %18 = arith.subf %4, %17 : vector<128x128xf32>
      %cst_10 = arith.constant dense<0x7F800000> : vector<128xf32>
      %19 = vector.multi_reduction <minimumf>, %18, %cst_10 [0] : vector<128x128xf32> to vector<128xf32>
      %20 = vector.shape_cast %19 : vector<128xf32> to vector<1x128xf32>
      %21 = vector.broadcast %20 : vector<1x128xf32> to vector<128x128xf32>
      %22 = arith.cmpf oeq, %18, %21 : vector<128x128xf32>
      %cst_11 = arith.constant 1.280000e+02 : f32
      %23 = vector.broadcast %cst_11 : f32 to vector<128x128xf32>
      %24 = arith.select %22, %1, %23 : vector<128x128xi1>, vector<128x128xf32>
      %cst_12 = arith.constant dense<0x7F800000> : vector<128xf32>
      %25 = vector.multi_reduction <minimumf>, %24, %cst_12 [0] : vector<128x128xf32> to vector<128xf32>
      %26 = vector.shape_cast %25 : vector<128xf32> to vector<1x128xf32>
      %27 = arith.fptosi %26 : vector<1x128xf32> to vector<1x128xi32>
      %28 = vector.broadcast %26 : vector<1x128xf32> to vector<128x128xf32>
      %29 = arith.cmpf oeq, %1, %28 : vector<128x128xf32>
      %30 = arith.extui %29 : vector<128x128xi1> to vector<128x128xi32>
      %31 = arith.sitofp %30 : vector<128x128xi32> to vector<128x128xf32>
      %c0_13 = arith.constant 0 : index
      %c0_14 = arith.constant 0 : index
      %32 = vector.load %arg3[%c0_13, %c0_14] : memref<4x128xf32, #tpu.memory_space<vmem>>, vector<4x128xf32>
      %cst_15 = arith.constant dense<0.000000e+00> : vector<4x128xf32>
      %33 = tpu.matmul %32, %31, %cst_15 {dimension_numbers = #tpu.dot_dimension_numbers<[1], [0], [0], [1], [0, 0, 1, 1], [], []>, precision = #tpu.contract_precision<fp32>} : vector<4x128xf32>, vector<128x128xf32>, vector<4x128xf32> -> vector<4x128xf32>
      %c0_16 = arith.constant 0 : index
      %34 = arith.index_cast %13 : i32 to index
      %35 = vector.load %arg5[%c0_16, %34] : memref<4x256xf32, #tpu.memory_space<vmem>>, vector<4x128xf32>
      tpu.vector_store %arg5[%c0_16, %34], %33 {strides = array<i32>} : memref<4x256xf32, #tpu.memory_space<vmem>>, vector<4x128xf32>,
      %36 = vector.shape_cast %27 : vector<1x128xi32> to vector<1x1x128xi32>
      %c0_17 = arith.constant 0 : index
      %c0_18 = arith.constant 0 : index
      %37 = arith.index_cast %13 : i32 to index
      %38 = vector.load %arg6[%c0_17, %c0_18, %37] : memref<1x1x256xi32, #tpu.memory_space<vmem>>, vector<1x1x128xi32>
      tpu.vector_store %arg6[%c0_17, %c0_18, %37], %36 {strides = array<i32>} : memref<1x1x256xi32, #tpu.memory_space<vmem>>, vector<1x1x128xi32>,
      %39 = arith.subf %33, %15 : vector<4x128xf32>
      %40 = arith.mulf %39, %39 : vector<4x128xf32>
      %cst_19 = arith.constant dense<0.000000e+00> : vector<128xf32>
      %41 = vector.multi_reduction <add>, %40, %cst_19 [0] : vector<4x128xf32> to vector<128xf32>
      %42 = vector.shape_cast %41 : vector<128xf32> to vector<1x128xf32>
      %43 = arith.addf %arg9, %42 : vector<1x128xf32>
      scf.yield %43 : vector<1x128xf32>
    }
    %c2_i32_1 = arith.constant 2 : i32
    %cst_2 = arith.constant dense<0.000000e+00> : vector<1xf32>
    %8 = vector.multi_reduction <add>, %7, %cst_2 [1] : vector<1x128xf32> to vector<1xf32>
    %9 = vector.shape_cast %8 : vector<1xf32> to vector<1x1xf32>
    %10 = vector.shape_cast %9 : vector<1x1xf32> to vector<1x1x1xf32>
    %c0_3 = arith.constant 0 : index
    %c0_4 = arith.constant 0 : index
    %c0_5 = arith.constant 0 : index
    %11 = vector.load %arg7[%c0_3, %c0_4, %c0_5] : memref<1x1x1xf32, #tpu.memory_space<vmem>>, vector<1x1x1xf32>
    tpu.vector_store %arg7[%c0_3, %c0_4, %c0_5], %10 {strides = array<i32>} : memref<1x1x1xf32, #tpu.memory_space<vmem>>, vector<1x1x1xf32>,
    return
  }
  func.func @transform_0(%arg0: i32) -> (i32, i32) {
    %c0_i32 = arith.constant 0 : i32
    %c0_i32_0 = arith.constant 0 : i32
    return %c0_i32, %arg0 : i32, i32
  }
  func.func @transform_1(%arg0: i32) -> (i32, i32) {
    %c0_i32 = arith.constant 0 : i32
    %c0_i32_0 = arith.constant 0 : i32
    %c0_i32_1 = arith.constant 0 : i32
    return %c0_i32, %c0_i32_0 : i32, i32
  }
  func.func @transform_2(%arg0: i32) -> (i32, i32) {
    %c0_i32 = arith.constant 0 : i32
    %c0_i32_0 = arith.constant 0 : i32
    %c0_i32_1 = arith.constant 0 : i32
    return %c0_i32, %c0_i32_0 : i32, i32
  }
  func.func @transform_3(%arg0: i32) -> (i32, i32) {
    %c0_i32 = arith.constant 0 : i32
    %c0_i32_0 = arith.constant 0 : i32
    %c0_i32_1 = arith.constant 0 : i32
    return %c0_i32, %c0_i32_0 : i32, i32
  }
  func.func @transform_4(%arg0: i32) -> (i32, i32) {
    %c0_i32 = arith.constant 0 : i32
    %c0_i32_0 = arith.constant 0 : i32
    return %c0_i32, %arg0 : i32, i32
  }
  func.func @transform_5(%arg0: i32) -> (i32, i32, i32) {
    %c0_i32 = arith.constant 0 : i32
    %c0_i32_0 = arith.constant 0 : i32
    %c0_i32_1 = arith.constant 0 : i32
    return %arg0, %c0_i32, %c0_i32_0 : i32, i32, i32
  }
  func.func @transform_6(%arg0: i32) -> (i32, i32, i32) {
    %c0_i32 = arith.constant 0 : i32
    %c0_i32_0 = arith.constant 0 : i32
    %c0_i32_1 = arith.constant 0 : i32
    return %arg0, %c0_i32, %c0_i32_0 : i32, i32, i32
  }
}

</mosaic_0001>

<bundles_post_ra>
// kernel: tpu_custom_call.1
= control target key start
LH: loop header
LB: loop body
LE: loop exit
PB: predicated region body
PF: predicated region fallthrough
CT: control target
= control target key end

     0   :  { %s4859_s0 = inlined_call_operand.vmem [shape: f32[4,512], index: 0, kind: input, shape index: {}]   ;;  %s4860_s1 = inlined_call_operand.vmem [shape: f32[128,4], index: 1, kind: input, shape index: {}]   ;;  %s4861_s2 = inlined_call_operand.vmem [shape: f32[4,128], index: 2, kind: input, shape index: {}]   ;;  %s4862_s3 = inlined_call_operand.vmem [shape: f32[128,1], index: 3, kind: input, shape index: {}]   ;;  %s4863_s4 = inlined_call_operand.hbm [shape: f32[4,512], index: 4, kind: output, shape index: {0}]   ;;  %s4864_s5 = inlined_call_operand.hbm [shape: s32[2,1,256], index: 5, kind: output, shape index: {1}]   ;;  %s4865_s6 = inlined_call_operand.vmem [shape: f32[2,1,1], index: 6, kind: output, shape index: {2}]  }
   0x1   :  { %4937 = sst [smem:[#allocation40_spill]] %s4859_s0 }
   0x2   :  { %12 = vsyncpa [#allocation3], 0 }
   0x3   :  { %14 = vsyncpa [#allocation3 + $0x1], 0 }
   0x4   :  { %15 = vsyncpa [#allocation5], 0 }
   0x5   :  { %17 = vsyncpa [#allocation5 + $0x1], 0  ;;  %s3654_s21 = smov 0   ;;  %s3656_s22 = smov 0  }
   0x6   :  { %s3658_s23 = smov 0   ;;  %s3660_s24 = smov 0  }
   0x7 LB: > { %s3675_s25 = sadd.s32 4294967295, %s3602_s24   ;;  %s2541_s26 = sadd.s32 4294967294, %s3602_s24   ;;  %s3602_s24 = sphi %s3660_s24, %s5114_s24   ;;  %s3598_s23 = sphi %s3658_s23, %s5113_s23   ;;  %s3594_s22 = sphi %s3656_s22, %s5112_s22   ;;  %s3590_s21 = sphi %s3654_s21, %s5111_s21  }
   0x8   : > { %s3679_s27 = sadd.s32 1, %s3602_s24   ;;  %s119_s28 = sadd.s32 1, %s3598_s23 }
   0x9   : > { %s116_s29 = ssub.s32 %s3602_s24, %s3679_s27  ;;  %p129_p0 = scmp.ne.s32.totalorder %s3598_s23, %s3594_s22 }
   0xa   : > { %p117_p1 = scmp.eq.s32.totalorder %s116_s29, 0  ;;  %p130_p2 = scmp.eq.s32.totalorder %s3675_s25, 1 }
   0xb   : > { %p135_p3 = scmp.ne.s32.totalorder %s3594_s22, %s3590_s21  ;;  %p136_p4 = scmp.eq.s32.totalorder %s2541_s26, 1 }
   0xc   : > { %s3690_s30 = scalar_select %p117_p1, %s3598_s23, %s119_s28  }
   0xd   : > { %p3692_p5 = por %p130_p2, %p129_p0  ;;  %p3696_p6 = por %p136_p4, %p135_p3 }
   0xe   : > { %p2544_p7 = scmp.ge.s32.totalorder %s3602_s24, 1  ;;  %p224_p8 = scmp.lt.s32.totalorder %s3602_s24, 3 }
  0x10   : > { %p225_p9 = pnand %p2544_p7, %p224_p8 }
  0x12   : > { %228 = sbr.rel (%p225_p9) target bundleno = 1217 (0x4c1), region = 36 }
  0x19   : > { %v307_v0 = vld [vmem:[%s4862_s3 + $0x10] sm:$0xff]  ;;  %v305_v1 = vld [vmem:[%s4862_s3] sm:$0xff]  ;;  %v3612_v2 = vmov 0   ;;  %v308_v3 = vld [vmem:[%s4862_s3 + $0x18] sm:$0xff]  ;;  %s2547_s28 = sshll.u32 %s3675_s25, 1  ;;  %v4866_v15 = vlaneseq  ;;  %s3755_s12 = sand.u32 1, %s3594_s22  }
  0x1a   : > { %3498 = vset.pattern.permute.xlu1 %v3612_v2  ;;  %3497 = vset.pattern.permute.xlu0 %v3612_v2  ;;  %v306_v4 = vld [vmem:[%s4862_s3 + $0x8] sm:$0xff]  ;;  %v309_v6 = vld [vmem:[%s4862_s3 + $0x20] sm:$0xff]  ;;  %v312_v7 = vld [vmem:[%s4862_s3 + $0x38] sm:$0xff]  ;;  %p263_p10 = scmp.lt.s32.totalorder %s2547_s28, 3  ;;  %p269_p11 = scmp.lt.s32.totalorder %s3675_s25, 1  ;;  %v3875_v2 = vmov 0.0  }
  0x1b   : > { %333 = vperm.xlu1 %3498, %v307_v0   ;;  %323 = vperm.xlu0 %3497, %v305_v1   ;;  %v310_v5 = vld [vmem:[%s4862_s3 + $0x28] sm:$0xff]  ;;  %v311_v8 = vld [vmem:[%s4862_s3 + $0x30] sm:$0xff]  ;;  %v313_v10 = vld [vmem:[%s4862_s3 + $0x40] sm:$0xff]  ;;  %v3746_v16 = vshrl.u32 %v4866_v15, 7  ;;  %s2545_s13 = sshll.u32 %s3755_s12, 3  ;;  %s2546_s14 = sshll.u32 %s3755_s12, 1 }
  0x1c   : > { %v314_v9 = vld [vmem:[%s4862_s3 + $0x48] sm:$0xff]  ;;  %v316_v11 = vld [vmem:[%s4862_s3 + $0x58] sm:$0xff]  ;;  %v315_v12 = vld [vmem:[%s4862_s3 + $0x50] sm:$0xff]  ;;  %s5116_s28 = smov (!%p263_p10, %s2547_s28), 3  ;;  %s4956_s0 = sld [smem:[#allocation40_spill]] }
  0x1d   : > { %v318_v13 = vld [vmem:[%s4862_s3 + $0x68] sm:$0xff]  ;;  %v317_v14 = vld [vmem:[%s4862_s3 + $0x60] sm:$0xff]  ;;  %4940 = vst [vmem:[#allocation8_spill] sm:$0xff] %v3746_v16  ;;  %v320_v17 = vld [vmem:[%s4862_s3 + $0x78] sm:$0xff]  ;;  %v3759_v19 = vadd.s32 8, %v3746_v16  ;;  %v3762_v20 = vadd.s32 16, %v3746_v16 }
  0x1e   : > { %v319_v18 = vld [vmem:[%s4862_s3 + $0x70] sm:$0xff]  ;;  %v3765_v21 = vadd.s32 24, %v3746_v16  ;;  %v3768_v22 = vadd.s32 32, %v3746_v16  ;;  %v3773_v23 = vadd.s32 40, %v3746_v16  ;;  %v3776_v24 = vadd.s32 48, %v3746_v16  ;;  %s2548_s15 = sshll.u32 %s5116_s28, 2 }
  0x1f   : > { %338 = vperm.xlu1 %3498, %v308_v3   ;;  %328 = vperm.xlu0 %3497, %v306_v4   ;;  %4941 = vst [vmem:[#allocation9_spill] sm:$0xff] %v3759_v19  ;;  %4942 = vst [vmem:[#allocation10_spill] sm:$0xff] %v3762_v20  ;;  %v3779_v25 = vadd.s32 56, %v3746_v16  ;;  %v3782_v26 = vadd.s32 64, %v3746_v16  ;;  %v3785_v27 = vadd.s32 72, %v3746_v16  ;;  %v3788_v28 = vadd.s32 80, %v3746_v16 }
  0x20   : > { %4943 = vst [vmem:[#allocation11_spill] sm:$0xff] %v3765_v21  ;;  %4944 = vst [vmem:[#allocation12_spill] sm:$0xff] %v3768_v22  ;;  %v3791_v29 = vadd.s32 88, %v3746_v16  ;;  %v3794_v30 = vadd.s32 96, %v3746_v16  ;;  %v3797_v31 = vadd.s32 104, %v3746_v16  ;;  %v3800_v32 = vadd.s32 112, %v3746_v16 }
  0x21   : > { %4945 = vst [vmem:[#allocation13_spill] sm:$0xff] %v3773_v23  ;;  %4946 = vst [vmem:[#allocation14_spill] sm:$0xff] %v3776_v24  ;;  %v3803_v33 = vadd.s32 120, %v3746_v16  ;;  %s3818_s19 = scalar_select %p269_p11, %s3675_s25, 1 }
  0x22   : > { %4947 = vst [vmem:[#allocation15_spill] sm:$0xff] %v3779_v25  ;;  %4948 = vst [vmem:[#allocation16_spill] sm:$0xff] %v3782_v26  ;;  %s3809_s18 = scalar_lea.vmem %s4956_s0, %s2548_s15  ;;  %s3869_s29 = scalar_lea.vmem [#allocation2], %s2545_s13 }
  0x23   : > { %348 = vperm.xlu1 %3498, %v310_v5   ;;  %343 = vperm.xlu0 %3497, %v309_v6   ;;  %4949 = vst [vmem:[#allocation17_spill] sm:$0xff] %v3785_v27  ;;  %4950 = vst [vmem:[#allocation18_spill] sm:$0xff] %v3788_v28  ;;  %s3873_s9 = scalar_lea.vmem [#allocation4], %s2546_s14  ;;  %s3877_s10 = smov 0  }
  0x24   : > { %4951 = vst [vmem:[#allocation19_spill] sm:$0xff] %v3791_v29  ;;  %4952 = vst [vmem:[#allocation20_spill] sm:$0xff] %v3794_v30 }
  0x25   : > { %4953 = vst [vmem:[#allocation21_spill] sm:$0xff] %v3797_v31  ;;  %4954 = vst [vmem:[#allocation22_spill] sm:$0xff] %v3800_v32 }
  0x26   : > { %4955 = vst [vmem:[#allocation23_spill] sm:$0xff] %v3803_v33 }
  0x27   : > { %358 = vperm.xlu1 %3498, %v312_v7   ;;  %353 = vperm.xlu0 %3497, %v311_v8  }
  0x2b   : > { %368 = vperm.xlu1 %3498, %v314_v9   ;;  %363 = vperm.xlu0 %3497, %v313_v10  }
  0x2f   : > { %378 = vperm.xlu1 %3498, %v316_v11   ;;  %373 = vperm.xlu0 %3497, %v315_v12  }
  0x33   : > { %388 = vperm.xlu1 %3498, %v318_v13   ;;  %383 = vperm.xlu0 %3497, %v317_v14  }
  0x37   : > { %398 = vperm.xlu1 %3498, %v320_v17   ;;  %393 = vperm.xlu0 %3497, %v319_v18  }
  0x9a   : > { %v3835_v50 = vpop.permute.xlu1 %333  ;;  %v3837_v51 = vpop.permute.xlu0 %323 }
  0x9b   : > { %4957 = vst [vmem:[#allocation24_spill] sm:$0xff] %v3835_v50  ;;  %4958 = vst [vmem:[#allocation25_spill] sm:$0xff] %v3837_v51 }
  0x9e   : > { %v3839_v52 = vpop.permute.xlu1 %338  ;;  %v3841_v53 = vpop.permute.xlu0 %328 }
  0x9f   : > { %4959 = vst [vmem:[#allocation26_spill] sm:$0xff] %v3839_v52  ;;  %4960 = vst [vmem:[#allocation27_spill] sm:$0xff] %v3841_v53 }
  0xa2   : > { %v3843_v54 = vpop.permute.xlu1 %348  ;;  %v3845_v55 = vpop.permute.xlu0 %343 }
  0xa3   : > { %4961 = vst [vmem:[#allocation28_spill] sm:$0xff] %v3843_v54  ;;  %4962 = vst [vmem:[#allocation29_spill] sm:$0xff] %v3845_v55 }
  0xa6   : > { %v3847_v56 = vpop.permute.xlu1 %358  ;;  %v3849_v57 = vpop.permute.xlu0 %353 }
  0xa7   : > { %4963 = vst [vmem:[#allocation30_spill] sm:$0xff] %v3847_v56  ;;  %4964 = vst [vmem:[#allocation31_spill] sm:$0xff] %v3849_v57 }
  0xaa   : > { %v3851_v58 = vpop.permute.xlu1 %368  ;;  %v3853_v59 = vpop.permute.xlu0 %363 }
  0xab   : > { %4965 = vst [vmem:[#allocation32_spill] sm:$0xff] %v3851_v58  ;;  %4966 = vst [vmem:[#allocation33_spill] sm:$0xff] %v3853_v59 }
  0xae   : > { %v3855_v60 = vpop.permute.xlu1 %378  ;;  %v3857_v61 = vpop.permute.xlu0 %373 }
  0xaf   : > { %4967 = vst [vmem:[#allocation34_spill] sm:$0xff] %v3855_v60  ;;  %4968 = vst [vmem:[#allocation35_spill] sm:$0xff] %v3857_v61 }
  0xb2   : > { %v3859_v62 = vpop.permute.xlu1 %388  ;;  %v3861_v63 = vpop.permute.xlu0 %383 }
  0xb3   : > { %4969 = vst [vmem:[#allocation36_spill] sm:$0xff] %v3859_v62 }
  0xb6   : > { %v3863_v0 = vpop.permute.xlu1 %398  ;;  %v3865_v1 = vpop.permute.xlu0 %393 }
  0xb7   : > { %4970 = vst [vmem:[#allocation37_spill] sm:$0xff] %v3863_v0  ;;  %4971 = vst [vmem:[#allocation38_spill] sm:$0xff] %v3865_v1 }
  0xb8 LB: >> { %4972 = vst [vmem:[#allocation39_spill] sm:$0xff] %v3606_v2  ;;  %vm4909_vm0 = vcmask 1043456   ;;  %v414_v3 = vld [vmem:[%s4860_s1] sm:$0xff]  ;;  %vm430_vm1 = vcmask 31744   ;;  %v415_v4 = vld [vmem:[%s4860_s1 + $0x8] sm:$0xff]  ;;  %v416_v5 = vld [vmem:[%s4860_s1 + $0x10] sm:$0xff]  ;;  %s3610_s10 = sphi %s3877_s10, %s406_s10   ;;  %v3606_v2 = vphi %v3875_v2, %v5109_v2  }
  0xb9   : >> { %v432_v6 = vsel %vm430_vm1, %v414_v3, 0  ;;  %v435_v7 = vsel %vm430_vm1, %v415_v4, 0  ;;  %v438_v8 = vsel %vm430_vm1, %v416_v5, 0  ;;  %v417_v9 = vld [vmem:[%s4860_s1 + $0x18] sm:$0xff]  ;;  %v418_v10 = vld [vmem:[%s4860_s1 + $0x20] sm:$0xff]  ;;  %v419_v11 = vld [vmem:[%s4860_s1 + $0x28] sm:$0xff] }
  0xba   : >> { %s2549_s16 = sshll.u32 %s3610_s10, 7  ;;  %v3907_v12 = vand.u32 4294901760, %v432_v6  ;;  %v3909_v13 = vand.u32 4294901760, %v435_v7  ;;  %v3911_v14 = vand.u32 4294901760, %v438_v8  ;;  %v441_v17 = vsel %vm430_vm1, %v417_v9, 0  ;;  %v420_v18 = vld [vmem:[%s4860_s1 + $0x30] sm:$0xff] }
  0xbb   : >> { %s3917_s26 = sshra.s32 %s2549_s16, 7  ;;  %v3919_v3 = vand.u32 4294901760, %v441_v17  ;;  %v444_v4 = vsel %vm430_vm1, %v418_v10, 0  ;;  %v447_v5 = vsel %vm430_vm1, %v419_v11, 0  ;;  %v450_v15 = vsel %vm430_vm1, %v420_v18, 0  ;;  %v421_v9 = vld [vmem:[%s4860_s1 + $0x38] sm:$0xff] }
  0xbc   : >> { %s2550_s14 = sshll.u32 %s3917_s26, 2  ;;  %v3929_v49 = vsub.f32 %v432_v6, %v3907_v12  ;;  %v3932_v48 = vsub.f32 %v435_v7, %v3909_v13  ;;  %v3935_v47 = vsub.f32 %v438_v8, %v3911_v14  ;;  %v3937_v46 = vand.u32 4294901760, %v444_v4  ;;  %v422_v36 = vld [vmem:[%s4860_s1 + $0x40] sm:$0xff]  ;;  %v423_v35 = vld [vmem:[%s4860_s1 + $0x48] sm:$0xff]  ;;  %v428_v25 = vld [vmem:[%s4860_s1 + $0x70] sm:$0xff]  ;;  %s2358_s16 = scalar_lea.vmem %s3873_s9, %s3917_s26 [#allocation4] }
  0xbd   : >> { %s3942_s15 = scalar_lea.vmem %s3809_s18, %s2550_s14  ;;  %v3945_v10 = vsub.f32 %v441_v17, %v3919_v3  ;;  %v3947_v11 = vand.u32 4294901760, %v447_v5  ;;  %v3949_v18 = vand.u32 4294901760, %v450_v15  ;;  %v453_v6 = vsel %vm430_vm1, %v421_v9, 0  ;;  %v4987_v53 = vld [vmem:[#allocation27_spill] sm:$0xff]  ;;  %v4988_v54 = vld [vmem:[#allocation28_spill] sm:$0xff]  ;;  %v4989_v51 = vld [vmem:[#allocation25_spill] sm:$0xff]  ;;  %s2356_s17 = scalar_lea.vmem %s3869_s29, %s2550_s14 [#allocation2] }
  0xbe   : >> { %v413_v7 = vld [vmem:[%s3942_s15] sm:$0xf]  ;;  %v4870_v45 = vand.u32 4294901760, %v3929_v49  ;;  %v4868_v8 = vand.u32 4294901760, %v3932_v48  ;;  %v4867_v44 = vand.u32 4294901760, %v3935_v47  ;;  %v3957_v43 = vsub.f32 %v444_v4, %v3937_v46  ;;  %v4991_v52 = vld [vmem:[#allocation26_spill] sm:$0xff] }
  0xbf   : >> { %v481_v42 = vsel %vm4909_vm0, %v413_v7, 0  ;;  %v4869_v17 = vand.u32 4294901760, %v3945_v10  ;;  %v3962_v41 = vsub.f32 %v447_v5, %v3947_v11  ;;  %v3965_v40 = vsub.f32 %v450_v15, %v3949_v18  ;;  %v4990_v55 = vld [vmem:[#allocation29_spill] sm:$0xff]  ;;  %v4992_v56 = vld [vmem:[#allocation30_spill] sm:$0xff]  ;;  %v4993_v50 = vld [vmem:[#allocation24_spill] sm:$0xff]  ;;  %s406_s10 = sadd.s32 1, %s3610_s10  }
  0xc0   : >> { %v3967_v9 = vand.u32 4294901760, %v481_v42  ;;  %v552_v39 = vsub.f32 %v3929_v49, %v4870_v45  ;;  %v562_v4 = vsub.f32 %v3932_v48, %v4868_v8  ;;  %v572_v7 = vsub.f32 %v3935_v47, %v4867_v44  ;;  %v4994_v57 = vld [vmem:[#allocation31_spill] sm:$0xff]  ;;  %v4995_v58 = vld [vmem:[#allocation32_spill] sm:$0xff]  ;;  %v4996_v59 = vld [vmem:[#allocation33_spill] sm:$0xff]  ;;  %p403_p12 = scmp.ge.s32.totalorder %s406_s10, 2  }
  0xc1   : >> { %v582_v5 = vsub.f32 %v3945_v10, %v4869_v17  ;;  %v4873_v15 = vand.u32 4294901760, %v3957_v43  ;;  %v4874_v38 = vand.u32 4294901760, %v3962_v41  ;;  %v4973_v33 = vand.u32 4294901760, %v3965_v40  ;;  %v4997_v60 = vld [vmem:[#allocation34_spill] sm:$0xff]  ;;  %v4998_v61 = vld [vmem:[#allocation35_spill] sm:$0xff]  ;;  %v4999_v62 = vld [vmem:[#allocation36_spill] sm:$0xff] }
  0xc2   : >> { %2830 = vmatprep.subr.mxu0 %v3967_v9  ;;  %v553_v34 = vand.u32 4294901760, %v552_v39  ;;  %v563_v44 = vand.u32 4294901760, %v562_v4  ;;  %v573_v8 = vand.u32 4294901760, %v572_v7  ;;  %v3992_v17 = vsub.f32 %v481_v42, %v3967_v9  ;;  %v424_v42 = vld [vmem:[%s4860_s1 + $0x50] sm:$0xff]  ;;  %v5000_v0 = vld [vmem:[#allocation37_spill] sm:$0xff]  ;;  %s2624_s26 = sshll.u32 (%p403_p12), %s3675_s25, 7 }
  0xc3   : >> { %2831 = vmatpush3.msra.mxu0 %v3967_v9  ;;  %v583_v45 = vand.u32 4294901760, %v582_v5  ;;  %v592_v37 = vsub.f32 %v3957_v43, %v4873_v15  ;;  %v602_v2 = vsub.f32 %v3962_v41, %v4874_v38  ;;  %v612_v39 = vsub.f32 %v3965_v40, %v4973_v33  ;;  %v425_v38 = vld [vmem:[%s4860_s1 + $0x58] sm:$0xff]  ;;  %v426_v33 = vld [vmem:[%s4860_s1 + $0x60] sm:$0xff]  ;;  %s2401_s14 = sshll.u32 (%p403_p12), %s3869_s29, 4  ;;  %s4792_s11 = scalar_lea.hbm (%p403_p12), %s4863_s4, %s2624_s26  ;;  %s2402_s14 = int_to_ptr.vmem [resolvable:$true] %s2401_s14 }
  0xc4   : >> { %2832 = vmatprep.mubr.f32.mxu0 %v553_v34  ;;  %v4008_v4 = vand.u32 4294901760, %v3992_v17  ;;  %v4010_v7 = vand.u32 4294901760, %v453_v6  ;;  %v456_v5 = vsel %vm430_vm1, %v422_v36, 0  ;;  %v459_v15 = vsel %vm430_vm1, %v423_v35, 0  ;;  %s2379_s13 = scalar_lea.sflag (%p403_p12), [#allocation3], %s3755_s12  ;;  %s3500_s28 = scalar_lea.vmem (%p403_p12), %s2402_s14, 128 }
  0xc5   : >> { %2833 = vmatmul.mubr.f32.vlgmr.msra.gmra.mrb[0].mxu0 %v563_v44  ;;  %v593_v32 = vand.u32 4294901760, %v592_v37  ;;  %v603_v34 = vand.u32 4294901760, %v602_v2  ;;  %v613_v31 = vand.u32 4294901760, %v612_v39  ;;  %v4020_v30 = vand.u32 4294901760, %v456_v5  ;;  %v427_v44 = vld [vmem:[%s4860_s1 + $0x68] sm:$0xff]  ;;  %p3501_p13 = scmp.ne.s32.totalorder (%p403_p12), %s2402_s14, %s3500_s28  ;;  %s3617_s10 = smov (%p403_p12), [#allocation2]  }
  0xc6   : >> { %2835 = vmatprep.mubr.f32.mxu0 %v573_v8  ;;  %v713_v36 = vsub.f32 %v3992_v17, %v4008_v4  ;;  %v4025_v35 = vsub.f32 %v453_v6, %v4010_v7  ;;  %v4027_v29 = vand.u32 4294901760, %v459_v15  ;;  %v462_v28 = vsel %vm430_vm1, %v424_v42, 0  ;;  %s3504_s18 = sshll.u32 (%p403_p12), %s3617_s10, 4  ;;  %s3505_s18 = int_to_ptr.vmem [resolvable:$false] %s3504_s18 }
  0xc7   : >> { %v4034_v37 = vsub.f32 %v456_v5, %v4020_v30  ;;  %v4036_v2 = vand.u32 4294901760, %v462_v28  ;;  %v465_v8 = vsel %vm430_vm1, %v425_v38, 0  ;;  %v468_v39 = vsel %vm430_vm1, %v426_v33, 0  ;;  %p3502_p0 = pnand (%p403_p12), %p3501_p13, %p3692_p5  ;;  %p3507_p2 = scmp.lt.s32.totalorder (%p403_p12), %s2402_s14, %s3505_s18 }
  0xc8   : >> { %v714_v27 = vand.u32 4294901760, %v713_v36  ;;  %v4897_v6 = vand.u32 4294901760, %v4025_v35  ;;  %v4042_v26 = vsub.f32 %v459_v15, %v4027_v29  ;;  %v4044_v42 = vand.u32 4294901760, %v465_v8 }
  0xc9   : >> { %2836 = vmatmul.mubr.f32.gmra.mrb[2].mxu0 %v583_v45  ;;  %v4898_v5 = vand.u32 4294901760, %v4034_v37  ;;  %v4051_v24 = vsub.f32 %v462_v28, %v4036_v2  ;;  %v4053_v38 = vand.u32 4294901760, %v468_v39  ;;  %v471_v33 = vsel %vm430_vm1, %v427_v44, 0  ;;  %p3503_p1 = pneg (%p403_p12), %p3502_p0 }
  0xca   : >> { %2856 = vmatprep.subr.mxu0 %v714_v27  ;;  %2838 = vmatprep.mubr.f32.mxu0 %v593_v32  ;;  %v622_v15 = vsub.f32 %v4025_v35, %v4897_v6  ;;  %v4905_v36 = vand.u32 4294901760, %v4042_v26  ;;  %v4061_v23 = vsub.f32 %v465_v8, %v4044_v42  ;;  %v4063_v45 = vand.u32 4294901760, %v471_v33  ;;  %v429_v6 = vld [vmem:[%s4860_s1 + $0x78] sm:$0xff] }
  0xcb   : >> { %2857 = vmatpush3.msra.mxu0 %v714_v27  ;;  %v632_v28 = vsub.f32 %v4034_v37, %v4898_v5  ;;  %v4070_v32 = vsub.f32 %v468_v39, %v4053_v38  ;;  %v474_v22 = vsel %vm430_vm1, %v428_v25, 0  ;;  %v4974_v21 = vand.u32 4294901760, %v4051_v24 }
  0xcc   : >> { %v623_v8 = vand.u32 4294901760, %v622_v15  ;;  %2882 = vmatprep.subr.mxu0 %v3992_v17  ;;  %v642_v27 = vsub.f32 %v4042_v26, %v4905_v36  ;;  %v4908_v5 = vand.u32 4294901760, %v4061_v23  ;;  %v4082_v44 = vsub.f32 %v471_v33, %v4063_v45 }
  0xcd   : >> { %2839 = vmatmul.mubr.f32.gmra.mrb[4].mxu0 %v603_v34  ;;  %v4084_v39 = vand.u32 4294901760, %v474_v22  ;;  %v633_v25 = vand.u32 4294901760, %v632_v28  ;;  %v652_v15 = vsub.f32 %v4051_v24, %v4974_v21  ;;  %v671_v20 = vand.u32 4294901760, %v4070_v32 }
  0xce   : >> { %2841 = vmatprep.mubr.f32.mxu0 %v613_v31  ;;  %v477_v34 = vsel %vm430_vm1, %v429_v6, 0  ;;  %v643_v33 = vand.u32 4294901760, %v642_v27  ;;  %v662_v31 = vsub.f32 %v4061_v23, %v4908_v5  ;;  %v681_v28 = vand.u32 4294901760, %v4082_v44 }
  0xcf   : >> { %v4092_v19 = vsub.f32 %v474_v22, %v4084_v39  ;;  %v4094_v36 = vand.u32 4294901760, %v477_v34  ;;  %v653_v21 = vand.u32 4294901760, %v652_v15  ;;  %v672_v22 = vsub.f32 %v4070_v32, %v671_v20 }
  0xd0   : >> { %v682_v27 = vsub.f32 %v4082_v44, %v681_v28  ;;  %vm4910_vm2 = vmmov 0  }
  0xd1   : >> { %2842 = vmatmul.mubr.f32.gmra.mrb[6].mxu0 %v623_v8  ;;  %v4101_v16 = vsub.f32 %v477_v34, %v4094_v36  ;;  %v691_v6 = vand.u32 4294901760, %v4092_v19  ;;  %v663_v8 = vand.u32 4294901760, %v662_v31  ;;  %v673_v1 = vand.u32 4294901760, %v672_v22 }
  0xd2   : >> { %2844 = vmatprep.mubr.f32.mxu0 %v633_v25  ;;  %v683_v15 = vand.u32 4294901760, %v682_v27  ;;  %v4978_v22 = vand.u32 4294901760, %v3945_v10  ;;  %v4980_v27 = vand.u32 4294901760, %v3962_v41 }
  0xd3   : >> { %v701_v5 = vand.u32 4294901760, %v4101_v16  ;;  %v692_v25 = vsub.f32 %v4092_v19, %v691_v6 }
  0xd5   : >> { %2845 = vmatmul.mubr.f32.gmra.mrb[8].mxu0 %v643_v33  ;;  %v702_v34 = vsub.f32 %v4101_v16, %v701_v5  ;;  %v693_v33 = vand.u32 4294901760, %v692_v25 }
  0xd6   : >> { %2847 = vmatprep.mubr.f32.mxu0 %v653_v21  ;;  %v4977_v21 = vand.u32 4294901760, %v3935_v47 }
  0xd7   : >> { %v703_v31 = vand.u32 4294901760, %v702_v34 }
  0xd9   : >> { %2848 = vmatmul.mubr.f32.gmra.mrb[10].mxu0 %v663_v8  ;;  %v4979_v8 = vand.u32 4294901760, %v3957_v43 }
  0xda   : >> { %2850 = vmatprep.mubr.f32.mxu0 %v673_v1  ;;  %v4975_v1 = vand.u32 4294901760, %v3929_v49 }
  0xdd   : >> { %2851 = vmatmul.mubr.f32.gmra.mrb[12].mxu0 %v683_v15 }
  0xde   : >> { %2853 = vmatprep.mubr.f32.mxu0 %v693_v33 }
  0xe1   : >> { %2854 = vmatmul.mubr.f32.gmra.mrb[14].mxu0 %v703_v31 }
  0xe2   : >> { %2858 = vmatprep.mubr.f32.mxu0 %v3907_v12 }
  0xe5   : >> { %2859 = vmatmul.mubr.f32.vlgmr.msra.gmra.mrb[0].mxu0 %v3909_v13 }
  0xe6   : >> { %2861 = vmatprep.mubr.f32.mxu0 %v3911_v14  ;;  %2883 = vmatpush3.msra.mxu0 %v3992_v17  ;;  %v4976_v17 = vand.u32 4294901760, %v3932_v48 }
  0xe7   : >> { %2908 = vmatprep.subr.mxu0 %v3967_v9 }
  0xe9   : >> { %2862 = vmatmul.mubr.f32.gmra.mrb[2].mxu0 %v3919_v3 }
  0xea   : >> { %2864 = vmatprep.mubr.f32.mxu0 %v3937_v46 }
  0xed   : >> { %2865 = vmatmul.mubr.f32.gmra.mrb[4].mxu0 %v3947_v11 }
  0xee   : >> { %2867 = vmatprep.mubr.f32.mxu0 %v3949_v18 }
  0xf1   : >> { %2868 = vmatmul.mubr.f32.gmra.mrb[6].mxu0 %v4010_v7 }
  0xf2   : >> { %2870 = vmatprep.mubr.f32.mxu0 %v4020_v30 }
  0xf5   : >> { %2871 = vmatmul.mubr.f32.gmra.mrb[8].mxu0 %v4027_v29 }
  0xf6   : >> { %2873 = vmatprep.mubr.f32.mxu0 %v4036_v2 }
  0xf9   : >> { %2874 = vmatmul.mubr.f32.gmra.mrb[10].mxu0 %v4044_v42 }
  0xfa   : >> { %2876 = vmatprep.mubr.f32.mxu0 %v4053_v38 }
  0xfd   : >> { %2877 = vmatmul.mubr.f32.gmra.mrb[12].mxu0 %v4063_v45 }
  0xfe   : >> { %2879 = vmatprep.mubr.f32.mxu0 %v4084_v39 }
 0x101   : >> { %2880 = vmatmul.mubr.f32.gmra.mrb[14].mxu0 %v4094_v36 }
 0x102   : >> { %2884 = vmatprep.mubr.f32.mxu0 %v3929_v49  ;;  %v4981_v49 = vand.u32 4294901760, %v3965_v40 }
 0x105   : >> { %2885 = vmatmul.mubr.f32.vlgmr.msra.gmra.mrb[0].mxu0 %v3932_v48  ;;  %v4982_v48 = vand.u32 4294901760, %v4025_v35 }
 0x106   : >> { %2887 = vmatprep.mubr.f32.mxu0 %v3935_v47  ;;  %2909 = vmatpush3.msra.mxu0 %v3967_v9  ;;  %v4983_v47 = vand.u32 4294901760, %v4034_v37 }
 0x107   : >> { %2934 = vmatprep.subr.mxu0 %v4008_v4 }
 0x109   : >> { %2888 = vmatmul.mubr.f32.gmra.mrb[2].mxu0 %v3945_v10  ;;  %v4985_v10 = vand.u32 4294901760, %v4051_v24 }
 0x10a   : >> { %2890 = vmatprep.mubr.f32.mxu0 %v3957_v43  ;;  %v4986_v43 = vand.u32 4294901760, %v4061_v23 }
 0x10d   : >> { %2891 = vmatmul.mubr.f32.gmra.mrb[4].mxu0 %v3962_v41 }
 0x10e   : >> { %2893 = vmatprep.mubr.f32.mxu0 %v3965_v40 }
 0x111   : >> { %2894 = vmatmul.mubr.f32.gmra.mrb[6].mxu0 %v4025_v35 }
 0x112   : >> { %2896 = vmatprep.mubr.f32.mxu0 %v4034_v37 }
 0x115   : >> { %2897 = vmatmul.mubr.f32.gmra.mrb[8].mxu0 %v4042_v26 }
 0x116   : >> { %2899 = vmatprep.mubr.f32.mxu0 %v4051_v24 }
 0x119   : >> { %2900 = vmatmul.mubr.f32.gmra.mrb[10].mxu0 %v4061_v23 }
 0x11a   : >> { %2902 = vmatprep.mubr.f32.mxu0 %v4070_v32 }
 0x11d   : >> { %2903 = vmatmul.mubr.f32.gmra.mrb[12].mxu0 %v4082_v44 }
 0x11e   : >> { %2905 = vmatprep.mubr.f32.mxu0 %v4092_v19  ;;  %v4924_v19 = vmov 0.0  }
 0x11f   : >> { %3018 = vmatprep.mubr.msk.f32.mxu1 %vm4910_vm2, %v4924_v19 }
 0x121   : >> { %2906 = vmatmul.mubr.f32.gmra.mrb[14].mxu0 %v4101_v16  ;;  %v4918_v16 = vmov 0.0|0.0  }
 0x122   : >> { %2910 = vmatprep.mubr.f32.mxu0 %v4975_v1  ;;  %3196 = vmatprep.subr.bf16.mxu1 %v4918_v16 }
 0x125   : >> { %2911 = vmatmul.mubr.f32.vlgmr.msra.gmra.mrb[0].mxu0 %v4976_v17 }
 0x126   : >> { %2913 = vmatprep.mubr.f32.mxu0 %v4977_v21  ;;  %2935 = vmatpush3.msra.mxu0 %v4008_v4  ;;  %v4984_v4 = vand.u32 4294901760, %v4042_v26 }
 0x127   : >> { %2960 = vmatprep.subr.mxu0 %v3967_v9 }
 0x129   : >> { %2914 = vmatmul.mubr.f32.gmra.mrb[2].mxu0 %v4978_v22 }
 0x12a   : >> { %2916 = vmatprep.mubr.f32.mxu0 %v4979_v8 }
 0x12d   : >> { %2917 = vmatmul.mubr.f32.gmra.mrb[4].mxu0 %v4980_v27 }
 0x12e   : >> { %2919 = vmatprep.mubr.f32.mxu0 %v4981_v49 }
 0x131   : >> { %2920 = vmatmul.mubr.f32.gmra.mrb[6].mxu0 %v4982_v48  ;;  %v5001_v48 = vld [vmem:[#allocation38_spill] sm:$0xff] }
 0x132   : >> { %2922 = vmatprep.mubr.f32.mxu0 %v4983_v47 }
 0x135   : >> { %2923 = vmatmul.mubr.f32.gmra.mrb[8].mxu0 %v4984_v4 }
 0x136   : >> { %2925 = vmatprep.mubr.f32.mxu0 %v4985_v10 }
 0x139   : >> { %2926 = vmatmul.mubr.f32.gmra.mrb[10].mxu0 %v4986_v43 }
 0x13a   : >> { %2928 = vmatprep.mubr.f32.mxu0 %v671_v20 }
 0x13d   : >> { %2929 = vmatmul.mubr.f32.gmra.mrb[12].mxu0 %v681_v28 }
 0x13e   : >> { %2931 = vmatprep.mubr.f32.mxu0 %v691_v6 }
 0x141   : >> { %2932 = vmatmul.mubr.f32.gmra.mrb[14].mxu0 %v701_v5 }
 0x142   : >> { %2936 = vmatprep.mubr.f32.mxu0 %v3907_v12 }
 0x145   : >> { %2937 = vmatmul.mubr.f32.vlgmr.msra.gmra.mrb[0].mxu0 %v3909_v13 }
 0x146   : >> { %2939 = vmatprep.mubr.f32.mxu0 %v3911_v14  ;;  %2961 = vmatpush3.msra.mxu0 %v3967_v9 }
 0x149   : >> { %2940 = vmatmul.mubr.f32.gmra.mrb[2].mxu0 %v3919_v3 }
 0x14a   : >> { %2942 = vmatprep.mubr.f32.mxu0 %v3937_v46 }
 0x14d   : >> { %2943 = vmatmul.mubr.f32.gmra.mrb[4].mxu0 %v3947_v11 }
 0x14e   : >> { %2945 = vmatprep.mubr.f32.mxu0 %v3949_v18 }
 0x151   : >> { %2946 = vmatmul.mubr.f32.gmra.mrb[6].mxu0 %v4010_v7 }
 0x152   : >> { %2948 = vmatprep.mubr.f32.mxu0 %v4020_v30 }
 0x155   : >> { %2949 = vmatmul.mubr.f32.gmra.mrb[8].mxu0 %v4027_v29 }
 0x156   : >> { %2951 = vmatprep.mubr.f32.mxu0 %v4036_v2 }
 0x159   : >> { %2952 = vmatmul.mubr.f32.gmra.mrb[10].mxu0 %v4044_v42 }
 0x15a   : >> { %2954 = vmatprep.mubr.f32.mxu0 %v4053_v38 }
 0x15d   : >> { %2955 = vmatmul.mubr.f32.gmra.mrb[12].mxu0 %v4063_v45 }
 0x15e   : >> { %2957 = vmatprep.mubr.f32.mxu0 %v4084_v39 }
 0x161   : >> { %2958 = vmatmul.mubr.f32.gmra.mrb[14].mxu0 %v4094_v36 }
 0x162   : >> { %2962 = vmatprep.mubr.f32.mxu0 %v3907_v12 }
 0x165   : >> { %2963 = vmatmul.mubr.f32.vlgmr.msra.gmra.mrb[0].mxu0 %v3909_v13 }
 0x166   : >> { %2965 = vmatprep.mubr.f32.mxu0 %v3911_v14 }
 0x169   : >> { %2966 = vmatmul.mubr.f32.gmra.mrb[2].mxu0 %v3919_v3 }
 0x16a   : >> { %2968 = vmatprep.mubr.f32.mxu0 %v3937_v46 }
 0x16d   : >> { %2969 = vmatmul.mubr.f32.gmra.mrb[4].mxu0 %v3947_v11 }
 0x16e   : >> { %2971 = vmatprep.mubr.f32.mxu0 %v3949_v18 }
 0x171   : >> { %2972 = vmatmul.mubr.f32.gmra.mrb[6].mxu0 %v4010_v7 }
 0x172   : >> { %2974 = vmatprep.mubr.f32.mxu0 %v4020_v30 }
 0x175   : >> { %2975 = vmatmul.mubr.f32.gmra.mrb[8].mxu0 %v4027_v29 }
 0x176   : >> { %2977 = vmatprep.mubr.f32.mxu0 %v4036_v2 }
 0x179   : >> { %2978 = vmatmul.mubr.f32.gmra.mrb[10].mxu0 %v4044_v42 }
 0x17a   : >> { %2980 = vmatprep.mubr.f32.mxu0 %v4053_v38 }
 0x17d   : >> { %2981 = vmatmul.mubr.f32.gmra.mrb[12].mxu0 %v4063_v45 }
 0x17e   : >> { %2983 = vmatprep.mubr.f32.mxu0 %v4084_v39 }
 0x181   : >> { %2984 = vmatmul.mubr.f32.gmra.mrb[14].mxu0 %v4094_v36 }
 0x238   : >> { %v2964_v20 = vpop.f32.mrb[0].mxu0 }
 0x239   : >> { %v1480_v23 = vpop.f32.mrb[1].mxu0  ;;  %v4224_v30 = vsub.f32 %v4987_v53, %v2964_v20 }
 0x23a   : >> { %v1574_v46 = vsub.f32 %v4989_v51, %v1480_v23 }
 0x23c   : >> { %v2967_v24 = vpop.f32.mrb[2].mxu0 }
 0x23d   : >> { %v1492_v26 = vpop.f32.mrb[3].mxu0  ;;  %v1577_v11 = vsub.f32 %v4991_v52, %v2967_v24 }
 0x23e   : >> { %v1576_v7 = vsub.f32 %v4993_v50, %v1492_v26 }
 0x240   : >> { %v2970_v29 = vpop.f32.mrb[4].mxu0 }
 0x241   : >> { %v4227_v40 = vsub.f32 %v4988_v54, %v2970_v29  ;;  %v1504_v41 = vpop.f32.mrb[5].mxu0 }
 0x242   : >> { %v4231_v12 = vsub.f32 %v4990_v55, %v1504_v41 }
 0x243   : >> { %v1591_v13 = vmin.f32 %v4224_v30, %v4227_v40 }
 0x244   : >> { %v1590_v14 = vmin.f32 %v1574_v46, %v4231_v12  ;;  %v2973_v3 = vpop.f32.mrb[6].mxu0 }
 0x245   : >> { %v4238_v18 = vsub.f32 %v4992_v56, %v2973_v3  ;;  %v1516_v9 = vpop.f32.mrb[7].mxu0 }
 0x246   : >> { %v1580_v35 = vsub.f32 %v4994_v57, %v1516_v9 }
 0x247   : >> { %v1593_v37 = vmin.f32 %v1577_v11, %v4238_v18 }
 0x248   : >> { %v1592_v2 = vmin.f32 %v1576_v7, %v1580_v35  ;;  %v2976_v42 = vpop.f32.mrb[8].mxu0 }
 0x249   : >> { %v1583_v5 = vsub.f32 %v4995_v58, %v2976_v42  ;;  %v1528_v38 = vpop.f32.mrb[9].mxu0  ;;  %v5103_v58 = vmov 0.0  }
 0x24a   : >> { %v1582_v36 = vsub.f32 %v4996_v59, %v1528_v38  ;;  %v5006_v38 = vld [vmem:[#allocation10_spill] sm:$0xff] }
 0x24b   : >> { %v1595_v45 = vmin.f32 %v1591_v13, %v1583_v5 }
 0x24c   : >> { %v1594_v44 = vmin.f32 %v1590_v14, %v1582_v36  ;;  %v2979_v32 = vpop.f32.mrb[10].mxu0  ;;  %v5002_v14 = vld [vmem:[#allocation8_spill] sm:$0xff] }
 0x24d   : >> { %v1585_v39 = vsub.f32 %v4997_v60, %v2979_v32  ;;  %v1540_v28 = vpop.f32.mrb[11].mxu0  ;;  %v5003_v3 = vcvt.s32.f32 %v5002_v14  ;;  %v5008_v32 = vld [vmem:[#allocation11_spill] sm:$0xff] }
 0x24e   : >> { %v1584_v6 = vsub.f32 %v4998_v61, %v1540_v28  ;;  %v5009_v28 = vcvt.s32.f32 %v5008_v32 }
 0x24f   : >> { %v1597_v25 = vmin.f32 %v1593_v37, %v1585_v39  ;;  %v5004_v37 = vld [vmem:[#allocation9_spill] sm:$0xff] }
 0x250   : >> { %v1596_v15 = vmin.f32 %v1592_v2, %v1584_v6  ;;  %v2982_v34 = vpop.f32.mrb[12].mxu0  ;;  %v5005_v2 = vcvt.s32.f32 %v5004_v37 }
 0x251   : >> { %v1587_v33 = vsub.f32 %v4999_v62, %v2982_v34  ;;  %v1552_v31 = vpop.f32.mrb[13].mxu0 }
 0x252   : >> { %v1586_v1 = vsub.f32 %v3861_v63, %v1552_v31 }
 0x253   : >> { %v1599_v17 = vmin.f32 %v1595_v45, %v1587_v33  ;;  %v5007_v45 = vcvt.s32.f32 %v5006_v38 }
 0x254   : >> { %v1598_v21 = vmin.f32 %v1594_v44, %v1586_v1  ;;  %v2985_v22 = vpop.f32.mrb[14].mxu0 }
 0x255   : >> { %v1589_v8 = vsub.f32 %v5000_v0, %v2985_v22  ;;  %v1564_v27 = vpop.f32.mrb[15].mxu0 }
 0x256   : >> { %v1602_v49 = vmin.f32 %v1598_v21, %v1599_v17  ;;  %v1588_v47 = vsub.f32 %v5001_v48, %v1564_v27 }
 0x257   : >> { %v1601_v4 = vmin.f32 %v1597_v25, %v1589_v8 }
 0x258   : >> { %v1600_v10 = vmin.f32 %v1596_v15, %v1588_v47  ;;  %v5010_v15 = vld [vmem:[#allocation12_spill] sm:$0xff] }
 0x259   : >> { %v5011_v34 = vcvt.s32.f32 %v5010_v15 }
 0x25a   : >> { %v1603_v43 = vmin.f32 %v1600_v10, %v1601_v4 }
 0x25c   : >> { %v1604_v20 = vmin.f32 %v1602_v49, %v1603_v43 }
 0x25e   : >> { %v1605_v23 = vrot.slane %v1604_v20, 4 }
 0x260   : >> { %v1606_v24 = vmin.f32 %v1604_v20, %v1605_v23 }
 0x262   : >> { %v1607_v26 = vrot.slane %v1606_v24, 2 }
 0x264   : >> { %v1608_v29 = vmin.f32 %v1606_v24, %v1607_v26  ;;  %v5020_v24 = vld [vmem:[#allocation17_spill] sm:$0xff] }
 0x266   : >> { %v1609_v41 = vrot.slane %v1608_v29, 1 }
 0x268   : >> { %v1610_v13 = vmin.f32 %v1608_v29, %v1609_v41  ;;  %v5022_v29 = vld [vmem:[#allocation18_spill] sm:$0xff] }
 0x26a   : >> { %vm1611_vm3 = vcmp.eq.f32.partialorder %v1574_v46, %v1610_v13  ;;  %vm1612_vm4 = vcmp.eq.f32.partialorder %v4224_v30, %v1610_v13  ;;  %vm1613_vm5 = vcmp.eq.f32.partialorder %v1576_v7, %v1610_v13  ;;  %vm1614_vm6 = vcmp.eq.f32.partialorder %v1577_v11, %v1610_v13  ;;  %v5012_v46 = vld [vmem:[#allocation13_spill] sm:$0xff]  ;;  %v5014_v30 = vld [vmem:[#allocation14_spill] sm:$0xff]  ;;  %v5016_v7 = vld [vmem:[#allocation15_spill] sm:$0xff] }
 0x26b   : >> { %vm1615_vm7 = vcmp.eq.f32.partialorder %v4231_v12, %v1610_v13  ;;  %vm1616_vm8 = vcmp.eq.f32.partialorder %v4227_v40, %v1610_v13  ;;  %vm1617_vm9 = vcmp.eq.f32.partialorder %v1580_v35, %v1610_v13  ;;  %vm1618_vm10 = vcmp.eq.f32.partialorder %v4238_v18, %v1610_v13  ;;  %v5018_v12 = vld [vmem:[#allocation16_spill] sm:$0xff] }
 0x26c   : >> { %vm1619_vm11 = vcmp.eq.f32.partialorder %v1582_v36, %v1610_v13  ;;  %vm1620_vm12 = vcmp.eq.f32.partialorder %v1583_v5, %v1610_v13  ;;  %vm1621_vm13 = vcmp.eq.f32.partialorder %v1584_v6, %v1610_v13  ;;  %vm1622_vm14 = vcmp.eq.f32.partialorder %v1585_v39, %v1610_v13 }
 0x26d   : >> { %vm1623_vm15 = vcmp.eq.f32.partialorder %v1586_v1, %v1610_v13  ;;  %vm1624_vm1 = vcmp.eq.f32.partialorder %v1587_v33, %v1610_v13  ;;  %vm1625_vm0 = vcmp.eq.f32.partialorder %v1588_v47, %v1610_v13  ;;  %vm1626_vm2 = vcmp.eq.f32.partialorder %v1589_v8, %v1610_v13  ;;  %v1713_v8 = vld [vmem:[%s4861_s2] sm:$0xf] }
 0x26e   : >> { %v1627_v9 = vsel %vm1611_vm3, %v5003_v3, 128.0  ;;  %v1628_v42 = vsel %vm1612_vm4, %v5005_v2, 128.0  ;;  %v1629_v44 = vsel %vm1613_vm5, %v5007_v45, 128.0  ;;  %v1630_v25 = vsel %vm1614_vm6, %v5009_v28, 128.0  ;;  %v5024_v3 = vld [vmem:[#allocation19_spill] sm:$0xff]  ;;  %v5026_v28 = vld [vmem:[#allocation20_spill] sm:$0xff] }
 0x26f   : >> { %v1631_v31 = vsel %vm1615_vm7, %v5011_v34, 128.0  ;;  %v5013_v17 = vcvt.s32.f32 %v5012_v46  ;;  %v5015_v22 = vcvt.s32.f32 %v5014_v30  ;;  %v5017_v49 = vcvt.s32.f32 %v5016_v7  ;;  %v5028_v34 = vld [vmem:[#allocation21_spill] sm:$0xff] }
 0x270   : >> { %v1643_v48 = vmin.f32 %v1627_v9, %v1631_v31  ;;  %v5019_v20 = vcvt.s32.f32 %v5018_v12  ;;  %v5021_v40 = vcvt.s32.f32 %v5020_v24  ;;  %v5023_v35 = vcvt.s32.f32 %v5022_v29 }
 0x271   : >> { %v1632_v21 = vsel %vm1616_vm8, %v5013_v17, 128.0  ;;  %v1633_v27 = vsel %vm1617_vm9, %v5015_v22, 128.0  ;;  %v1634_v11 = vsel %vm1618_vm10, %v5017_v49, 128.0  ;;  %v5025_v2 = vcvt.s32.f32 %v5024_v3  ;;  %v5030_v17 = vld [vmem:[#allocation22_spill] sm:$0xff]  ;;  %v5032_v22 = vld [vmem:[#allocation23_spill] sm:$0xff] }
 0x272   : >> { %v1644_v4 = vmin.f32 %v1628_v42, %v1632_v21  ;;  %v1645_v10 = vmin.f32 %v1629_v44, %v1633_v27  ;;  %v1646_v43 = vmin.f32 %v1630_v25, %v1634_v11  ;;  %v1635_v23 = vsel %vm1619_vm11, %v5019_v20, 128.0 }
 0x273   : >> { %v1636_v26 = vsel %vm1620_vm12, %v5021_v40, 128.0  ;;  %v1637_v41 = vsel %vm1621_vm13, %v5023_v35, 128.0  ;;  %v1638_v18 = vsel %vm1622_vm14, %v5025_v2, 128.0  ;;  %v1647_v9 = vmin.f32 %v1643_v48, %v1635_v23 }
 0x274   : >> { %v1648_v42 = vmin.f32 %v1644_v4, %v1636_v26  ;;  %v1649_v45 = vmin.f32 %v1645_v10, %v1637_v41  ;;  %v1650_v44 = vmin.f32 %v1646_v43, %v1638_v18  ;;  %v5027_v25 = vcvt.s32.f32 %v5026_v28 }
 0x275   : >> { %v5029_v31 = vcvt.s32.f32 %v5028_v34  ;;  %v5031_v21 = vcvt.s32.f32 %v5030_v17  ;;  %v5033_v27 = vcvt.s32.f32 %v5032_v22  ;;  %v5034_v35 = vcvt.s32.f32 %v5002_v14 }
 0x276   : >> { %v1639_v36 = vsel %vm1623_vm15, %v5027_v25, 128.0  ;;  %v5037_v2 = vcvt.s32.f32 %v5004_v37  ;;  %v4915_v25 = vmov 1.0|1.0   ;;  %v5065_v41 = vmov 0 }
 0x277   : >> { %v1640_v5 = vsel %vm1624_vm1, %v5029_v31, 128.0  ;;  %v1641_v6 = vsel %vm1625_vm0, %v5031_v21, 128.0  ;;  %v1642_v39 = vsel %vm1626_vm2, %v5033_v27, 128.0  ;;  %v1651_v49 = vmin.f32 %v1647_v9, %v1639_v36 }
 0x278   : >> { %v1652_v11 = vmin.f32 %v1648_v42, %v1640_v5  ;;  %v1653_v48 = vmin.f32 %v1649_v45, %v1641_v6  ;;  %v1654_v4 = vmin.f32 %v1650_v44, %v1642_v39  ;;  %v5040_v9 = vlaneseq  ;;  %v5108_v6 = vld [vmem:[#allocation39_spill] sm:$0xff] }
 0x279   : >> { %v4333_v45 = vand.u32 4294901760, %v1713_v8  ;;  %v5043_v36 = vcvt.s32.f32 %v5006_v38  ;;  %v5046_v5 = vcvt.s32.f32 %v5008_v32  ;;  %v5051_v39 = vcvt.s32.f32 %v5010_v15 }
 0x27a   : >> { %v1655_v1 = vmin.f32 %v1651_v49, %v1652_v11  ;;  %v1656_v10 = vmin.f32 %v1653_v48, %v1654_v4  ;;  %vm2361_vm3 = vcmp.lt.s32.totalorder %v5040_v9, 128  ;;  %v5054_v11 = vcvt.s32.f32 %v5012_v46 }
 0x27b   : >> { %v4360_v27 = vsub.f32 %v1713_v8, %v4333_v45  ;;  %v5070_v31 = vcvt.s32.f32 %v5020_v24 }
 0x27c   : >> { %v1657_v43 = vmin.f32 %v1655_v1, %v1656_v10 }
 0x27e   : >> { %v1658_v20 = vrot.slane %v1657_v43, 4 }
 0x280   : >> { %v1659_v33 = vmin.f32 %v1657_v43, %v1658_v20  ;;  %v4912_v43 = vand.u32 4294901760, %v4360_v27  ;;  %v5059_v20 = vcvt.s32.f32 %v5014_v30 }
 0x282   : >> { %v1660_v23 = vrot.slane %v1659_v33, 2 }
 0x284   : >> { %v1661_v40 = vmin.f32 %v1659_v33, %v1660_v23  ;;  %v5062_v23 = vcvt.s32.f32 %v5016_v7 }
 0x286   : >> { %v1662_v26 = vrot.slane %v1661_v40, 1 }
 0x288   : >> { %v1663_v47 = vmin.f32 %v1661_v40, %v1662_v26 }
 0x28a   : >> { %v3430_v13 = vtrunc.f32 %v1663_v47  ;;  %vm4312_vm0 = vcmp.eq.f32.partialorder %v5034_v35, %v1663_v47  ;;  %vm4318_vm2 = vcmp.eq.f32.partialorder %v5037_v2, %v1663_v47  ;;  %vm4340_vm5 = vcmp.eq.f32.partialorder %v5043_v36, %v1663_v47 }
 0x28b   : >> { %vm4329_vm4 = vmpackc.low %vm4318_vm2, %vm4312_vm0  ;;  %vm4346_vm6 = vcmp.eq.f32.partialorder %v5046_v5, %v1663_v47  ;;  %vm4367_vm8 = vcmp.eq.f32.partialorder %v5051_v39, %v1663_v47  ;;  %vm4373_vm9 = vcmp.eq.f32.partialorder %v5054_v11, %v1663_v47  ;;  %v2551_v4 = vsel %vm4312_vm0, 1.0, %v4924_v19 }
 0x28c   : >> { %v3431_v44 = vcvt.f32.s32 %v3430_v13  ;;  %3198 = vmatpush3.bf16.msk.msra.mxu1 %vm4329_vm4, %v4915_v25  ;;  %vm4355_vm7 = vmpackc.low %vm4346_vm6, %vm4340_vm5  ;;  %v2552_v1 = vsel %vm4318_vm2, 1.0, %v4924_v19  ;;  %vm4398_vm11 = vcmp.eq.f32.partialorder %v5059_v20, %v1663_v47  ;;  %vm4404_vm12 = vcmp.eq.f32.partialorder %v5062_v23, %v1663_v47 }
 0x28d   : >> { %3199 = vmatprep.subr.bf16.mxu1 %v4918_v16  ;;  %vm4388_vm10 = vmpackc.low %vm4373_vm9, %vm4367_vm8  ;;  %v4408_v26 = vsub.f32 %v2551_v4, %v2551_v4  ;;  %v4410_v8 = vsub.f32 %v2552_v1, %v2552_v1  ;;  %v2553_v13 = vsel %vm4340_vm5, 1.0, %v4924_v19  ;;  %v2554_v35 = vsel %vm4346_vm6, 1.0, %v4924_v19 }
 0x28e   : >> { %2363 = vst.msk [vmem:[%s2358_s16] sm:$0x1] %vm2361_vm3, %v3431_v44  ;;  %vm4423_vm13 = vmpackc.low %vm4404_vm12, %vm4398_vm11  ;;  %v4430_v2 = vsub.f32 %v4360_v27, %v4912_v43  ;;  %v4432_v18 = vsub.f32 %v2553_v13, %v2553_v13  ;;  %v4434_v9 = vsub.f32 %v2554_v35, %v2554_v35  ;;  %v5067_v44 = vcvt.s32.f32 %v5018_v12  ;;  %s3506_s16 = scalar_lea.vmem (%p403_p12), %s3505_s18, 256 }
 0x28f   : >> { %v5066_v41 = vsel %vm4423_vm13, 4294967295, %v5065_v41  ;;  %vm4447_vm15 = vcmp.eq.f32.partialorder %v5070_v31, %v1663_v47  ;;  %v1815_v39 = vand.u32 4294901760, %v4410_v8  ;;  %v5073_v11 = vcvt.s32.f32 %v5022_v29  ;;  %p3508_p3 = scmp.lt.s32.totalorder (%p403_p12), %s3506_s16, %s3500_s28 }
 0x290   : >> { %3201 = vmatpush3.bf16.msk.msra.mxu1 %vm4355_vm7, %v4915_v25  ;;  %vm4441_vm14 = vcmp.eq.f32.partialorder %v5067_v44, %v1663_v47  ;;  %v5076_v1 = vcvt.s32.f32 %v5024_v3  ;;  %v5079_v23 = vcvt.s32.f32 %v5026_v28  ;;  %v5082_v35 = vcvt.s32.f32 %v5028_v34 }
 0x291   : >> { %3202 = vmatprep.subr.bf16.mxu1 %v4918_v16  ;;  %vm4456_vm1 = vcmp.eq.f32.partialorder %v5073_v11, %v1663_v47  ;;  %v5085_v31 = vcvt.s32.f32 %v5030_v17  ;;  %v2558_v21 = vsel %vm4404_vm12, 1.0, %v4924_v19  ;;  %v2559_v49 = vsel %vm4441_vm14, 1.0, %v4924_v19  ;;  %p3509_p4 = por (%p403_p12), %p3508_p3, %p3507_p2 }
 0x292   : >> { %vm4462_vm0 = vcmp.eq.f32.partialorder %v5076_v1, %v1663_v47  ;;  %vm4468_vm2 = vcmp.eq.f32.partialorder %v5079_v23, %v1663_v47  ;;  %vm4474_vm3 = vcmp.eq.f32.partialorder %v5082_v35, %v1663_v47  ;;  %v5088_v1 = vcvt.s32.f32 %v5032_v22 }
 0x293   : >> { %vm4480_vm5 = vcmp.eq.f32.partialorder %v5085_v31, %v1663_v47  ;;  %v2555_v23 = vsel %vm4367_vm8, 1.0, %v4924_v19  ;;  %v2556_v35 = vsel %vm4373_vm9, 1.0, %v4924_v19  ;;  %v2557_v31 = vsel %vm4398_vm11, 1.0, %v4924_v19  ;;  %vm4554_vm8 = vmpackc.low %vm4462_vm0, %vm4456_vm1  ;;  %p3510_p7 = pnand (%p403_p12), %p3509_p4, %p3503_p1 }
 0x294   : >> { %3204 = vmatpush3.bf16.msk.msra.mxu1 %vm4388_vm10, %v4915_v25  ;;  %vm4486_vm6 = vcmp.eq.f32.partialorder %v5088_v1, %v1663_v47  ;;  %v2560_v48 = vsel %vm4447_vm15, 1.0, %v4924_v19  ;;  %v2561_v33 = vsel %vm4456_vm1, 1.0, %v4924_v19  ;;  %v2562_v40 = vsel %vm4462_vm0, 1.0, %v4924_v19  ;;  %vm4592_vm9 = vmpackc.low %vm4474_vm3, %vm4468_vm2 }
 0x295   : >> { %3205 = vmatprep.subr.bf16.mxu1 %v4918_v16  ;;  %v2563_v36 = vsel %vm4468_vm2, 1.0, %v4924_v19  ;;  %v2564_v5 = vsel %vm4474_vm3, 1.0, %v4924_v19  ;;  %v2565_v1 = vsel %vm4480_vm5, 1.0, %v4924_v19  ;;  %v4538_v0 = vsub.f32 %v2555_v23, %v2555_v23  ;;  %vm4617_vm11 = vmpackc.low %vm4486_vm6, %vm4480_vm5 }
 0x296   : >> { %v4540_v3 = vsub.f32 %v2556_v35, %v2556_v35  ;;  %v4544_v7 = vsub.f32 %v2558_v21, %v2558_v21  ;;  %v4546_v12 = vsub.f32 %v2559_v49, %v2559_v49  ;;  %v4548_v14 = vsub.f32 %v2560_v48, %v2560_v48 }
 0x297   : >> { %v4558_v23 = vsub.f32 %v2561_v33, %v2561_v33  ;;  %v4560_v35 = vsub.f32 %v2562_v40, %v2562_v40  ;;  %v4565_v21 = vsub.f32 %v2563_v36, %v2563_v36  ;;  %v4567_v49 = vsub.f32 %v2564_v5, %v2564_v5 }
 0x298   : >> { %3207 = vmatpush3.bf16.msk.msra.mxu1 %vm4423_vm13, %v4915_v25  ;;  %vm4506_vm13 = vmpackc.low %vm4447_vm15, %vm4441_vm14  ;;  %v4569_v48 = vsub.f32 %v2565_v1, %v2565_v1  ;;  %v5096_v20 = vand.u32 4294901760, %v4408_v26  ;;  %v1816_v33 = vsub.f32 %v4410_v8, %v1815_v39  ;;  %v1822_v40 = vand.u32 4294901760, %v4432_v18 }
 0x299   : >> { %3208 = vmatprep.subr.bf16.mxu1 %v4918_v16  ;;  %v1829_v17 = vand.u32 4294901760, %v4434_v9  ;;  %v5097_v22 = vmov 0.0|0.0   ;;  %v1836_v36 = vand.u32 4294901760, %v4538_v0  ;;  %v1843_v5 = vand.u32 4294901760, %v4540_v3 }
 0x29a   : >> { %v1864_v24 = vand.u32 4294901760, %v4546_v12  ;;  %v1878_v28 = vand.u32 4294901760, %v4558_v23  ;;  %v1885_v29 = vand.u32 4294901760, %v4560_v35  ;;  %v1892_v32 = vand.u32 4294901760, %v4565_v21 }
 0x29b   : >> { %v1899_v34 = vand.u32 4294901760, %v4567_v49  ;;  %v1906_v37 = vand.u32 4294901760, %v4569_v48  ;;  %v1817_v13 = vand.u32 4294901760, %v1816_v33  ;;  %v1799_v44 = vand.u32 4294901760, %v4430_v2 }
 0x29c   : >> { %3210 = vmatpush3.bf16.msk.msra.mxu1 %vm4506_vm13, %v4915_v25  ;;  %v2566_v25 = vsel %vm4486_vm6, 1.0, %v4924_v19  ;;  %v1809_v19 = vsub.f32 %v4408_v26, %v5096_v20  ;;  %v1871_v20 = vand.u32 4294901760, %v4548_v14  ;;  %v1823_v50 = vsub.f32 %v4432_v18, %v1822_v40 }
 0x29d   : >> { %3211 = vmatprep.subr.bf16.mxu1 %v4918_v16  ;;  %v4542_v16 = vsub.f32 %v2557_v31, %v2557_v31  ;;  %v5095_v31 = vmov 1.0|1.0   ;;  %v4571_v4 = vsub.f32 %v2566_v25, %v2566_v25  ;;  %v1857_v25 = vand.u32 4294901760, %v4544_v7 }
 0x29e   : >> { %v1810_v46 = vand.u32 4294901760, %v1809_v19  ;;  %v1830_v51 = vsub.f32 %v4434_v9, %v1829_v17  ;;  %v5100_v52 = vand.u32 4294901760, %v4408_v26  ;;  %v4611_v54 = vpack.c.bf16 %v1829_v17, %v1822_v40 }
 0x29f   : >> { %v1850_v1 = vand.u32 4294901760, %v4542_v16  ;;  %v1913_v38 = vand.u32 4294901760, %v4571_v4  ;;  %v4621_v33 = vpack.c.bf16 %v1843_v5, %v1836_v36  ;;  %v4625_v55 = vpack.c.bf16 %v1871_v20, %v1864_v24 }
 0x2a0   : >> { %3213 = vmatpush3.bf16.msk.msra.mxu1 %vm4554_vm8, %v5095_v31  ;;  %v4609_v53 = vpack.c.bf16 %v1815_v39, %v5100_v52  ;;  %v4627_v56 = vpack.c.bf16 %v1885_v29, %v1878_v28  ;;  %v4632_v52 = vpack.c.bf16 %v1899_v34, %v1892_v32  ;;  %v3221_v43 = vpack.c.bf16 %v1817_v13, %v1810_v46 }
 0x2a1   : >> { %3214 = vmatprep.subr.bf16.mxu1 %v5097_v22  ;;  %v4623_v2 = vpack.c.bf16 %v1857_v25, %v1850_v1  ;;  %v4634_v17 = vpack.c.bf16 %v1913_v38, %v1906_v37  ;;  %v1824_v39 = vand.u32 4294901760, %v1823_v50  ;;  %v1831_v11 = vand.u32 4294901760, %v1830_v51 }
 0x2a2   : >> { %v1837_v40 = vsub.f32 %v4538_v0, %v1836_v36  ;;  %v1844_v57 = vsub.f32 %v4540_v3, %v1843_v5  ;;  %vm5104_vm12 = vmmov 0   ;;  %v1851_v59 = vsub.f32 %v4542_v16, %v1850_v1 }
 0x2a3   : >> { %v3224_v60 = vpack.c.bf16 %v1831_v11, %v1824_v39  ;;  %v1858_v46 = vsub.f32 %v4544_v7, %v1857_v25  ;;  %v1865_v50 = vsub.f32 %v4546_v12, %v1864_v24  ;;  %v1872_v13 = vsub.f32 %v4548_v14, %v1871_v20 }
 0x2a4   : >> { %3216 = vmatpush3.bf16.msk.msra.mxu1 %vm4592_vm9, %v5095_v31  ;;  %v1838_v61 = vand.u32 4294901760, %v1837_v40  ;;  %v1845_v62 = vand.u32 4294901760, %v1844_v57  ;;  %v1852_v36 = vand.u32 4294901760, %v1851_v59  ;;  %v1879_v57 = vsub.f32 %v4558_v23, %v1878_v28 }
 0x2a5   : >> { %3217 = vmatprep.subr.bf16.mxu1 %v5097_v22  ;;  %v1859_v5 = vand.u32 4294901760, %v1858_v46  ;;  %v1886_v25 = vsub.f32 %v4560_v35, %v1885_v29  ;;  %v1900_v24 = vsub.f32 %v4567_v49, %v1899_v34  ;;  %v1907_v20 = vsub.f32 %v4569_v48, %v1906_v37 }
 0x2a6   : >> { %v3227_v51 = vpack.c.bf16 %v1845_v62, %v1838_v61  ;;  %v1880_v59 = vand.u32 4294901760, %v1879_v57  ;;  %v1914_v29 = vsub.f32 %v4571_v4, %v1913_v38  ;;  %v3245_v37 = vpack.c.bf16 %v4410_v8, %v4408_v26 }
 0x2a7   : >> { %v3230_v1 = vpack.c.bf16 %v1859_v5, %v1852_v36  ;;  %v1887_v62 = vand.u32 4294901760, %v1886_v25  ;;  %v1901_v28 = vand.u32 4294901760, %v1900_v24  ;;  %v3248_v38 = vpack.c.bf16 %v4434_v9, %v4432_v18 }
 0x2a8   : >> { %3219 = vmatpush3.bf16.msk.msra.mxu1 %vm4617_vm11, %v5095_v31  ;;  %v1915_v46 = vand.u32 4294901760, %v1914_v29  ;;  %v3254_v26 = vpack.c.bf16 %v4544_v7, %v4542_v16  ;;  %v3257_v8 = vpack.c.bf16 %v4548_v14, %v4546_v12  ;;  %v3260_v18 = vpack.c.bf16 %v4560_v35, %v4558_v23 }
 0x2a9   : >> { %3220 = vmatprep.subr.bf16.mxu1 %v5097_v22  ;;  %v3236_v39 = vpack.c.bf16 %v1887_v62, %v1880_v59  ;;  %v3266_v16 = vpack.c.bf16 %v4571_v4, %v4569_v48  ;;  %vm5105_vm14 = vnez %v5066_v41  ;;  %v5106_v14 = vand.u32 4294901760, %v4360_v27 }
 0x2ab   : >> { %3019 = vmatmul.mubr.f32.vlgmr.msra.gmra.mrb[0].mxu1 %v1799_v44  ;;  %v1866_v44 = vand.u32 4294901760, %v1865_v50  ;;  %v3251_v50 = vpack.c.bf16 %v4540_v3, %v4538_v0  ;;  %v3263_v0 = vpack.c.bf16 %v4567_v49, %v4565_v21 }
 0x2ac   : >> { %3222 = vmatpush3.bf16.msra.mxu1 %v3221_v43  ;;  %3053 = vmatprep.mubr.msk.f32.mxu1 %vm5104_vm12, %v5103_v58  ;;  %v1873_v43 = vand.u32 4294901760, %v1872_v13 }
 0x2ad   : >> { %3223 = vmatprep.subr.bf16.mxu1 %v5097_v22 }
 0x2ae   : >> { %v3233_v61 = vpack.c.bf16 %v1873_v43, %v1866_v44 }
 0x2b0   : >> { %3225 = vmatpush3.bf16.msra.mxu1 %v3224_v60  ;;  %v1893_v60 = vsub.f32 %v4565_v21, %v1892_v32  ;;  %v1908_v32 = vand.u32 4294901760, %v1907_v20 }
 0x2b1   : >> { %3226 = vmatprep.subr.bf16.mxu1 %v5097_v22 }
 0x2b2   : >> { %v1894_v11 = vand.u32 4294901760, %v1893_v60  ;;  %v3242_v34 = vpack.c.bf16 %v1915_v46, %v1908_v32 }
 0x2b4   : >> { %3228 = vmatpush3.bf16.msra.mxu1 %v3227_v51  ;;  %v3239_v40 = vpack.c.bf16 %v1901_v28, %v1894_v11 }
 0x2b5   : >> { %3229 = vmatprep.subr.bf16.mxu1 %v5097_v22 }
 0x2b8   : >> { %3231 = vmatpush3.bf16.msra.mxu1 %v3230_v1 }
 0x2b9   : >> { %3232 = vmatprep.subr.bf16.mxu1 %v5097_v22 }
 0x2bc   : >> { %3234 = vmatpush3.bf16.msra.mxu1 %v3233_v61 }
 0x2bd   : >> { %3235 = vmatprep.subr.bf16.mxu1 %v5097_v22 }
 0x2c0   : >> { %3237 = vmatpush3.bf16.msra.mxu1 %v3236_v39 }
 0x2c1   : >> { %3238 = vmatprep.subr.bf16.mxu1 %v5097_v22 }
 0x2c4   : >> { %3240 = vmatpush3.bf16.msra.mxu1 %v3239_v40 }
 0x2c5   : >> { %3241 = vmatprep.subr.bf16.mxu1 %v5097_v22 }
 0x2c8   : >> { %3243 = vmatpush3.bf16.msra.mxu1 %v3242_v34 }
 0x2c9   : >> { %3244 = vmatprep.subr.bf16.mxu1 %v5097_v22 }
 0x2cb   : >> { %3054 = vmatmul.mubr.f32.vlgmr.msra.gmra.mrb[0].mxu1 %v4333_v45 }
 0x2cc   : >> { %3246 = vmatpush3.bf16.msra.mxu1 %v3245_v37  ;;  %3088 = vmatprep.mubr.msk.f32.mxu1 %vm5104_vm12, %v5103_v58 }
 0x2cd   : >> { %3247 = vmatprep.subr.bf16.mxu1 %v5097_v22 }
 0x2d0   : >> { %3249 = vmatpush3.bf16.msra.mxu1 %v3248_v38 }
 0x2d1   : >> { %3250 = vmatprep.subr.bf16.mxu1 %v5097_v22 }
 0x2d4   : >> { %3252 = vmatpush3.bf16.msra.mxu1 %v3251_v50 }
 0x2d5   : >> { %3253 = vmatprep.subr.bf16.mxu1 %v5097_v22 }
 0x2d8   : >> { %3255 = vmatpush3.bf16.msra.mxu1 %v3254_v26 }
 0x2d9   : >> { %3256 = vmatprep.subr.bf16.mxu1 %v5097_v22 }
 0x2dc   : >> { %3258 = vmatpush3.bf16.msra.mxu1 %v3257_v8 }
 0x2dd   : >> { %3259 = vmatprep.subr.bf16.mxu1 %v5097_v22 }
 0x2e0   : >> { %3261 = vmatpush3.bf16.msra.mxu1 %v3260_v18 }
 0x2e1   : >> { %3262 = vmatprep.subr.bf16.mxu1 %v5097_v22 }
 0x2e4   : >> { %3264 = vmatpush3.bf16.msra.mxu1 %v3263_v0 }
 0x2e5   : >> { %3265 = vmatprep.subr.bf16.mxu1 %v5097_v22 }
 0x2e8   : >> { %3267 = vmatpush3.bf16.msra.mxu1 %v3266_v16 }
 0x2e9   : >> { %3268 = vmatprep.subr.bf16.mxu1 %v5097_v22 }
 0x2eb   : >> { %3089 = vmatmul.mubr.f32.vlgmr.msra.gmra.mrb[0].mxu1 %v4360_v27 }
 0x2ec   : >> { %3270 = vmatpush3.bf16.msk.msra.mxu1 %vm4329_vm4, %v5095_v31  ;;  %3123 = vmatprep.mubr.msk.f32.mxu1 %vm5104_vm12, %v5103_v58 }
 0x2ed   : >> { %3271 = vmatprep.subr.bf16.mxu1 %v5097_v22 }
 0x2f0   : >> { %3273 = vmatpush3.bf16.msk.msra.mxu1 %vm4355_vm7, %v5095_v31 }
 0x2f1   : >> { %3274 = vmatprep.subr.bf16.mxu1 %v5097_v22 }
 0x2f4   : >> { %3276 = vmatpush3.bf16.msk.msra.mxu1 %vm4388_vm10, %v5095_v31 }
 0x2f5   : >> { %3277 = vmatprep.subr.bf16.mxu1 %v5097_v22 }
 0x2f8   : >> { %3279 = vmatpush3.bf16.msk.msra.mxu1 %vm5105_vm14, %v5095_v31 }
 0x2f9   : >> { %3280 = vmatprep.subr.bf16.mxu1 %v5097_v22 }
 0x2fc   : >> { %3282 = vmatpush3.bf16.msk.msra.mxu1 %vm4506_vm13, %v5095_v31 }
 0x2fd   : >> { %3283 = vmatprep.subr.bf16.mxu1 %v5097_v22 }
 0x300   : >> { %3285 = vmatpush3.bf16.msk.msra.mxu1 %vm4554_vm8, %v5095_v31 }
 0x301   : >> { %3286 = vmatprep.subr.bf16.mxu1 %v5097_v22 }
 0x304   : >> { %3288 = vmatpush3.bf16.msk.msra.mxu1 %vm4592_vm9, %v5095_v31 }
 0x305   : >> { %3289 = vmatprep.subr.bf16.mxu1 %v5097_v22 }
 0x308   : >> { %3291 = vmatpush3.bf16.msk.msra.mxu1 %vm4617_vm11, %v5095_v31 }
 0x309   : >> { %3292 = vmatprep.subr.bf16.mxu1 %v5097_v22 }
 0x30b   : >> { %3124 = vmatmul.mubr.f32.vlgmr.msra.gmra.mrb[0].mxu1 %v5106_v14 }
 0x30c   : >> { %3294 = vmatpush3.bf16.msra.mxu1 %v4609_v53  ;;  %3158 = vmatprep.mubr.msk.f32.mxu1 %vm5104_vm12, %v5103_v58 }
 0x30d   : >> { %3295 = vmatprep.subr.bf16.mxu1 %v5097_v22 }
 0x310   : >> { %3297 = vmatpush3.bf16.msra.mxu1 %v4611_v54  ;;  %v3499_v54 = vld [vmem:[%s3942_s15] sm:$0xf] }
 0x311   : >> { %3298 = vmatprep.subr.bf16.mxu1 %v5097_v22 }
 0x314   : >> { %3300 = vmatpush3.bf16.msra.mxu1 %v4621_v33 }
 0x315   : >> { %3301 = vmatprep.subr.bf16.mxu1 %v5097_v22 }
 0x318   : >> { %3303 = vmatpush3.bf16.msra.mxu1 %v4623_v2 }
 0x319   : >> { %3304 = vmatprep.subr.bf16.mxu1 %v5097_v22 }
 0x31c   : >> { %3306 = vmatpush3.bf16.msra.mxu1 %v4625_v55 }
 0x31d   : >> { %3307 = vmatprep.subr.bf16.mxu1 %v5097_v22 }
 0x320   : >> { %3309 = vmatpush3.bf16.msra.mxu1 %v4627_v56 }
 0x321   : >> { %3310 = vmatprep.subr.bf16.mxu1 %v5097_v22 }
 0x324   : >> { %3312 = vmatpush3.bf16.msra.mxu1 %v4632_v52 }
 0x325   : >> { %3313 = vmatprep.subr.bf16.mxu1 %v5097_v22 }
 0x328   : >> { %3315 = vmatpush3.bf16.msra.mxu1 %v4634_v17 }
 0x329   : >> { %3316 = vmatprep.subr.bf16.mxu1 %v5097_v22 }
 0x32b   : >> { %3159 = vmatmul.mubr.f32.vlgmr.msra.gmra.mrb[0].mxu1 %v4333_v45 }
 0x32c   : >> { %3318 = vmatpush3.bf16.msk.msra.mxu1 %vm4329_vm4, %v5095_v31  ;;  %3193 = vmatprep.mubr.msk.f32.mxu1 %vm5104_vm12, %v5103_v58  ;;  %vm5107_vm4 = vcmask 1043456  }
 0x32d   : >> { %3319 = vmatprep.subr.bf16.mxu1 %v5097_v22 }
 0x330   : >> { %3321 = vmatpush3.bf16.msk.msra.mxu1 %vm4355_vm7, %v5095_v31 }
 0x331   : >> { %3322 = vmatprep.subr.bf16.mxu1 %v5097_v22 }
 0x334   : >> { %3324 = vmatpush3.bf16.msk.msra.mxu1 %vm4388_vm10, %v5095_v31 }
 0x335   : >> { %3325 = vmatprep.subr.bf16.mxu1 %v5097_v22 }
 0x338   : >> { %3327 = vmatpush3.bf16.msk.msra.mxu1 %vm5105_vm14, %v5095_v31 }
 0x339   : >> { %3328 = vmatprep.subr.bf16.mxu1 %v5097_v22 }
 0x33c   : >> { %3330 = vmatpush3.bf16.msk.msra.mxu1 %vm4506_vm13, %v5095_v31 }
 0x33d   : >> { %3331 = vmatprep.subr.bf16.mxu1 %v5097_v22 }
 0x340   : >> { %3333 = vmatpush3.bf16.msk.msra.mxu1 %vm4554_vm8, %v5095_v31 }
 0x341   : >> { %3334 = vmatprep.subr.bf16.mxu1 %v5097_v22 }
 0x344   : >> { %3336 = vmatpush3.bf16.msk.msra.mxu1 %vm4592_vm9, %v5095_v31 }
 0x345   : >> { %3337 = vmatprep.subr.bf16.mxu1 %v5097_v22 }
 0x348   : >> { %3339 = vmatpush3.bf16.msk.msra.mxu1 %vm4617_vm11, %v5095_v31 }
 0x34b   : >> { %3194 = vmatmul.mubr.f32.vlgmr.msra.gmra.mrb[0].mxu1 %v4333_v45 }
 0x41e   : >> { %v2351_v53 = vpop.f32.mrb[0].mxu1 }
 0x41f   : >> { %2357 = vst [vmem:[%s2356_s17] sm:$0xf] %v2351_v53  ;;  %v2364_v55 = vsub.f32 %v2351_v53, %v3499_v54  ;;  %v3195_v56 = vpop.f32.mrb[1].mxu1 }
 0x421   : >> { %v2365_v58 = vmul.f32 %v2364_v55, %v2364_v55 }
 0x423   : >> { %v2366_v15 = vsel %vm5107_vm4, %v2365_v58, 0.0 }
 0x424   : >> { %v2367_v30 = vrot.slane %v2366_v15, 4 }
 0x426   : >> { %v2368_v7 = vadd.f32 %v2367_v30, %v2366_v15 }
 0x428   : >> { %v2369_v12 = vrot.slane %v2368_v7, 2 }
 0x42a   : >> { %v2370_v3 = vadd.f32 %v2369_v12, %v2368_v7 }
 0x42c   : >> { %v2371_v22 = vrot.slane %v2370_v3, 1  ;;  %405 = sbr.rel (!%p403_p12) target bundleno = 184 (0xb8), region = 110 }
 0x42e   : >> { %v2372_v42 = vadd.f32 %v2371_v22, %v2370_v3 }
 0x430   : >> { %v2373_v27 = vadd.f32 %v5108_v6, %v2372_v42  }
 0x432   : >> { %v5109_v2 = vmov %v2373_v27  ;;  %2374 = vadd.xlane.f32.xlu0 (%p403_p12), %v2373_v27 }
 0x433   : > { %3513 = shalt.err (!%p3510_p7)
}
 0x434   : > { %s3514_s29 = scalar_lea.hbm %s4792_s11, 128  ;;  %s3518_s15 = scalar_lea.hbm %s4863_s4, 256 }
 0x435   : > { %p3515_p8 = scmp.ne.s32.totalorder %s4792_s11, %s3514_s29  ;;  %p3519_p11 = scmp.lt.u32.totalorder %s4792_s11, %s4863_s4 }
 0x436   : > { %p3520_p12 = scmp.lt.u32.totalorder %s3518_s15, %s3514_s29  ;;  %p3522_p0 = scmp.lt.u32.totalorder %s3514_s29, %s4792_s11 }
 0x437   : > { %p3516_p9 = pnand %p3515_p8, %p3692_p5 }
 0x438   : > { %p3521_p13 = por %p3520_p12, %p3519_p11 }
 0x439   : > { %p3517_p10 = pneg %p3516_p9 }
 0x43a   : > { %p3523_p1 = por %p3522_p0, %p3521_p13 }
 0x43c   : > { %p3524_p2 = pnand %p3523_p1, %p3517_p10 }
 0x43e   : > { %3527 = shalt.err (!%p3524_p2)
}
 0x43f   : > { %3432 = dma.vmem_to_hbm [thread:$0]  (%p3692_p5), %s2402_s14, 128, %s4792_s11, %s2379_s13  }
 0x440   : > { %s2625_s28 = sshll.u32 %s3675_s25, 5  ;;  %s2415_s18 = sshll.u32 %s3873_s9, 4  ;;  %s2416_s18 = int_to_ptr.vmem [resolvable:$true] %s2415_s18 }
 0x441   : > { %s4817_s26 = scalar_lea.hbm %s4864_s5, %s2625_s28  ;;  %s2384_s29 = scalar_lea.sflag [#allocation5], %s3755_s12 }
 0x442   : > { %s3528_s15 = scalar_lea.vmem %s2416_s18, 32  ;;  %s3618_s20 = smov [#allocation4]  }
 0x443   : > { %p3529_p3 = scmp.ne.s32.totalorder %s2416_s18, %s3528_s15  ;;  %s3532_s10 = sshll.u32 %s3618_s20, 4  ;;  %s3533_s10 = int_to_ptr.vmem [resolvable:$false] %s3532_s10 }
 0x444   : > { %s3534_s0 = scalar_lea.vmem %s3533_s10, 64  ;;  %p3535_p8 = scmp.lt.s32.totalorder %s2416_s18, %s3533_s10 }
 0x445   : > { %p3530_p4 = pnand %p3529_p3, %p3692_p5  ;;  %p3536_p9 = scmp.lt.s32.totalorder %s3534_s0, %s3528_s15 }
 0x447   : > { %p3531_p7 = pneg %p3530_p4  ;;  %p3537_p10 = por %p3536_p9, %p3535_p8 }
 0x449   : > { %p3538_p11 = pnand %p3537_p10, %p3531_p7 }
 0x44b   : > { %3541 = shalt.err (!%p3538_p11)
}
 0x44c   : > { %s3542_s25 = scalar_lea.hbm %s4817_s26, 32  ;;  %s3546_s14 = scalar_lea.hbm %s4864_s5, 64 }
 0x44d   : > { %p3543_p12 = scmp.ne.s32.totalorder %s4817_s26, %s3542_s25  ;;  %p3547_p1 = scmp.lt.u32.totalorder %s4817_s26, %s4864_s5 }
 0x44e   : > { %p3548_p2 = scmp.lt.u32.totalorder %s3546_s14, %s3542_s25  ;;  %p3550_p4 = scmp.lt.u32.totalorder %s3542_s25, %s4817_s26 }
 0x44f   : > { %p3544_p13 = pnand %p3543_p12, %p3692_p5 }
 0x450   : > { %p3549_p3 = por %p3548_p2, %p3547_p1 }
 0x451   : > { %p3545_p0 = pneg %p3544_p13 }
 0x452   : > { %p3551_p7 = por %p3550_p4, %p3549_p3 }
 0x454   : > { %p3552_p8 = pnand %p3551_p7, %p3545_p0 }
 0x456   : > { %3555 = shalt.err (!%p3552_p8)
}
 0x457   : > { %3433 = dma.vmem_to_hbm [thread:$0]  (%p3692_p5), %s2416_s18, 32, %s4817_s26, %s2384_s29   ;;  %vm2376_vm7 = vcmask 0  }
 0x458   : > { %s5110_s16 = scalar_lea.vmem %s4865_s6, %s3818_s19 }
 0x4bf   : > { %v2375_v63 = vpop.xlane.xlu0 %2374 }
 0x4c0   : > { %2377 = vst.msk [vmem:[%s5110_s16] sm:$0x1] %vm2376_vm7, %v2375_v63 }
 0x4c1 PF: > { %p3443_p9 = scmp.ge.s32.totalorder %s3602_s24, 2  ;;  %s2430_s17 = sand.u32 1, %s3590_s21  }
 0x4c2   : > { %s2431_s15 = scalar_lea.sflag [#allocation3], %s2430_s17 }
 0x4c3   : > { %p3437_p10 = pnand %p3443_p9, %p3696_p6 }
 0x4c5   : > { %3581 = dma.done.wait (!%p3437_p10), %s2431_s15, 128  }
 0x4c6   : > { %3583 = vsyncadd (!%p3437_p10), %s2431_s15, 4294967168  ;;  %s2440_s7 = scalar_lea.sflag [#allocation5], %s2430_s17 }
 0x4c7   : > { %3585 = dma.done.wait (!%p3437_p10), %s2440_s7, 32  }
 0x4c8   : > { %3587 = vsyncadd (!%p3437_p10), %s2440_s7, 4294967264  ;;  %p20_p5 = scmp.ge.s32.totalorder %s3679_s27, 4   ;;  %s5111_s21 = smov %s3594_s22 }
 0x4c9   : > { %s5112_s22 = smov %s3598_s23  ;;  %s5113_s23 = smov %s3690_s30 }
 0x4ca   : > { %s5114_s24 = smov %s3679_s27  ;;  %22 = sbr.rel (!%p20_p5) target bundleno = 7 (0x7), region = 121 }
 0x4d1   :  { %2451 = vsyncpa [#allocation3], 1 }
 0x4d2   :  { %2453 = vsyncpa [#allocation3 + $0x1], 1 }
 0x4d3   :  { %2454 = vsyncpa [#allocation5], 1 }
 0x4d4   :  { %2456 = vsyncpa [#allocation5 + $0x1], 1 }

</bundles_post_ra>
